<compile_context>
chip_gen: v7x
topology: tpu7x:2x2x1
jax: 0.10.0
libtpu: 0.0.40
codegen_flags: <defaults>
</compile_context>

<pallas_src>
from functools import partial

import jax
import jax.numpy as jnp
from jax import lax
from jax.experimental import pallas as pl
from jax.experimental.pallas import tpu as pltpu


def _round_up(x, m):
    return (x + m - 1) // m * m


def _contrastive_kernel(a_ref, b_ref, rlab_ref, clab_ref, out_ref,
                        lhs_scr, m_scr, l_scr, spos_scr, norm_scr, *,
                        temperature, n_valid, self_contrast, tm, tn):
    i = pl.program_id(0)          # row block
    j = pl.program_id(1)          # column block (online-LSE reduction axis)
    nj = pl.num_programs(1)

    # ---- per-row-block init: normalize LHS once, reset accumulators ----------
    @pl.when(j == 0)
    def _():
        a = a_ref[...].astype(jnp.float32)                       # [TM, Dp]
        ss = jnp.sum(a * a, axis=1, keepdims=True)
        inv = 1.0 / jnp.maximum(jnp.sqrt(ss), 1e-12)             # F.normalize eps
        # Fold temperature into the LHS: contrast*T == (a_n*T) @ b_n^T
        lhs_scr[...] = a * (inv * temperature)
        m_scr[...] = jnp.full((tm, 1), -jnp.inf, jnp.float32)
        l_scr[...] = jnp.zeros((tm, 1), jnp.float32)
        spos_scr[...] = jnp.zeros((tm, 1), jnp.float32)
        norm_scr[...] = jnp.zeros((tm, 1), jnp.float32)

    # ---- normalize current RHS column block ----------------------------------
    b = b_ref[...].astype(jnp.float32)                           # [TN, Dp]
    ssb = jnp.sum(b * b, axis=1, keepdims=True)
    b_n = b * (1.0 / jnp.maximum(jnp.sqrt(ssb), 1e-12))

    # contrast tile [TM, TN]; contract on the feature dim (no .T / XLU transpose)
    s = lax.dot_general(lhs_scr[...], b_n,
                        dimension_numbers=(((1,), (1,)), ((), ())),
                        preferred_element_type=jnp.float32)

    # ---- masks built in-kernel from indices + labels -------------------------
    col_ids = j * tn + lax.broadcasted_iota(jnp.int32, (tm, tn), 1)
    col_valid = col_ids < n_valid
    if self_contrast:
        row_ids = i * tm + lax.broadcasted_iota(jnp.int32, (tm, tn), 0)
        lmask = jnp.logical_and(col_valid, row_ids != col_ids)   # 1 - eye
    else:
        lmask = col_valid                                        # all ones
    pmask = jnp.logical_and(lmask, rlab_ref[...] == clab_ref[...])
    pmask_f = pmask.astype(jnp.float32)

    # positives: sum(mask * contrast) and the positive count per row
    spos_scr[...] += jnp.sum(pmask_f * s, axis=1, keepdims=True)
    norm_scr[...] += jnp.sum(pmask_f, axis=1, keepdims=True)

    # ---- online masked log-sum-exp over column blocks -------------------------
    s_masked = jnp.where(lmask, s, -jnp.inf)
    m_new = jnp.maximum(m_scr[...], jnp.max(s_masked, axis=1, keepdims=True))
    m_safe = jnp.where(m_new == -jnp.inf, 0.0, m_new)
    alpha = jnp.exp(m_scr[...] - m_safe)
    p = jnp.where(lmask, jnp.exp(s - m_safe), 0.0)
    l_scr[...] = alpha * l_scr[...] + jnp.sum(p, axis=1, keepdims=True)
    m_scr[...] = m_new

    # ---- finalize per-row mean_log_prob_pos on the last column block ----------
    @pl.when(j == nj - 1)
    def _():
        norm = norm_scr[...]
        norm_g = jnp.where(norm == 0.0, 1.0, norm)
        lse = m_scr[...] + jnp.log(l_scr[...])                   # masked LSE per row
        # sum(mask * (contrast - LSE)) / norm_guard, with the norm==0 -> 0 behavior
        out_ref[...] = (spos_scr[...] - norm * lse) / norm_g


def contrastive_loss(features_a, labels=None, features_b=None, *,
                     temperature=1.0):
    """JAX/Pallas equivalent of ContrastiveLoss.forward (2-D feature path)."""
    n, d = features_a.shape
    self_contrast = features_b is None
    fb = features_a if self_contrast else features_b

    # Effective per-sample labels so that mask[r, c] == (lab[r] == lab[c]).
    if labels is None:
        eff_labels = jnp.arange(n, dtype=jnp.int32)              # mask = eye(N)
    else:
        lab = labels.astype(jnp.int32).reshape(-1)
        num_labels = lab.shape[0]
        if num_labels != n:
            # PyTorch: assert num_labels * 2 == num_features; mask = mask.repeat(2, 2)
            assert num_labels * 2 == n
            lab = jnp.concatenate([lab, lab])
        eff_labels = lab

    # Tiling: square, lane-dense tiles (column block multiple of 128).
    t = min(256, _round_up(n, 128))
    tm = tn = t
    n_pad = _round_up(n, t)
    d_pad = _round_up(d, 128)

    def pad2(x):
        pr, pc = n_pad - x.shape[0], d_pad - x.shape[1]
        return jnp.pad(x, ((0, pr), (0, pc))) if (pr or pc) else x

    fa_p = pad2(features_a)
    fb_p = fa_p if self_contrast else pad2(fb)                   # shared HBM buffer if self-contrast

    lab_pad = jnp.pad(eff_labels, (0, n_pad - n), constant_values=-1)
    row_labels = lab_pad.reshape(n_pad, 1)                       # O(N) instead of O(N^2) masks
    col_labels = lab_pad.reshape(1, n_pad)

    grid = (n_pad // tm, n_pad // tn)

    kernel = partial(_contrastive_kernel,
                     temperature=float(temperature), n_valid=n,
                     self_contrast=self_contrast, tm=tm, tn=tn)

    mean_log_prob_pos = pl.pallas_call(
        kernel,
        out_shape=jax.ShapeDtypeStruct((n_pad, 1), jnp.float32),
        grid_spec=pltpu.PrefetchScalarGridSpec(
            num_scalar_prefetch=0,
            grid=grid,
            in_specs=[
                pl.BlockSpec((tm, d_pad), lambda i, j: (i, 0)),  # LHS row block
                pl.BlockSpec((tn, d_pad), lambda i, j: (j, 0)),  # RHS col block
                pl.BlockSpec((tm, 1), lambda i, j: (i, 0)),      # row labels
                pl.BlockSpec((1, tn), lambda i, j: (0, j)),      # col labels
            ],
            out_specs=pl.BlockSpec((tm, 1), lambda i, j: (i, 0)),
            scratch_shapes=[
                pltpu.VMEM((tm, d_pad), jnp.float32),            # normalized+scaled LHS
                pltpu.VMEM((tm, 1), jnp.float32),                # running max
                pltpu.VMEM((tm, 1), jnp.float32),                # running exp-sum
                pltpu.VMEM((tm, 1), jnp.float32),                # sum(mask * contrast)
                pltpu.VMEM((tm, 1), jnp.float32),                # positive count
            ]),
        compiler_params=pltpu.CompilerParams(
            dimension_semantics=("parallel", "arbitrary"),
            vmem_limit_bytes=48 * 1024 * 1024),                  # headroom for v7x 64 MiB VMEM
    )(fa_p, fb_p, row_labels, col_labels)

    # Tiny O(N) epilogue (keeps the row grid axis fully parallel in the kernel).
    return -jnp.mean(mean_log_prob_pos[:n, 0])


def _reference_loss(features_a, features_b, labels, temperature):
    """Pure-JAX reference replicating the PyTorch forward (2-D path)."""
    n = features_a.shape[0]
    if features_b is None:
        fb = features_a
        logits_mask = 1.0 - jnp.eye(n, dtype=jnp.float32)
    else:
        fb = features_b
        logits_mask = jnp.ones((n, n), jnp.float32)
    if labels is None:
        mask = jnp.eye(n, dtype=jnp.float32)
    else:
        lab = labels.reshape(-1, 1)
        mask = (lab == lab.T).astype(jnp.float32)
        if labels.shape[0] != n:
            mask = jnp.tile(mask, (2, 2))
    a = features_a / jnp.maximum(
        jnp.linalg.norm(features_a, axis=1, keepdims=True), 1e-12)
    b = fb / jnp.maximum(jnp.linalg.norm(fb, axis=1, keepdims=True), 1e-12)
    contrast = jnp.matmul(a, b.T, precision=jax.lax.Precision.HIGHEST) * temperature
    mask = mask * logits_mask
    norm = jnp.sum(mask, axis=1)
    norm = jnp.where(norm == 0.0, 1.0, norm)
    logits = contrast - jnp.max(contrast, axis=1, keepdims=True)
    exp_logits = jnp.exp(logits) * logits_mask
    log_prob = logits - jnp.log(jnp.sum(exp_logits, axis=1, keepdims=True))
    return -jnp.mean(jnp.sum(mask * log_prob, axis=1) / norm)


# TODO(synk): the 4-D feature path delegates to an external `attention` module
# (contrast = attention(features_a, features_b)); not translatable without it.

if __name__ == "__main__":
    key = jax.random.PRNGKey(0)
    k1, k2, k3, k4, k5 = jax.random.split(key, 5)

    # Case 1: self-contrast path (features_b=None), small shapes.
    N, D = 8, 32
    temperature = 0.5
    fa = jax.random.normal(k1, (N, D), dtype=jnp.float32)
    labels = jax.random.randint(k2, (N,), 0, 4)
    loss = jax.block_until_ready(
        contrastive_loss(fa, labels=labels, features_b=None, temperature=temperature))
    ref = jax.block_until_ready(_reference_loss(fa, None, labels, temperature))
    assert jnp.allclose(loss, ref, rtol=1e-5, atol=1e-5), (loss, ref)

    # Case 2: explicit features_b path (logits_mask == ones).
    fb = jax.random.normal(k3, (N, D), dtype=jnp.float32)
    loss2 = jax.block_until_ready(
        contrastive_loss(fa, labels=labels, features_b=fb, temperature=temperature))
    ref2 = jax.block_until_ready(_reference_loss(fa, fb, labels, temperature))
    assert jnp.allclose(loss2, ref2, rtol=1e-5, atol=1e-5), (loss2, ref2)

    # Case 3: num_labels * 2 == num_features (torch's mask.repeat(2, 2) branch).
    labels_half = jax.random.randint(k2, (N // 2,), 0, 3)
    loss3 = jax.block_until_ready(
        contrastive_loss(fa, labels=labels_half, features_b=None, temperature=1.0))
    ref3 = jax.block_until_ready(_reference_loss(fa, None, labels_half, 1.0))
    assert jnp.allclose(loss3, ref3, rtol=1e-5, atol=1e-5), (loss3, ref3)

    # Case 4: multi-tile path (grid 2x2, row/col padding, online LSE across blocks).
    N4, D4 = 300, 48
    fa4 = jax.random.normal(k4, (N4, D4), dtype=jnp.float32)
    labels4 = jax.random.randint(k5, (N4,), 0, 10)
    loss4 = jax.block_until_ready(
        contrastive_loss(fa4, labels=labels4, features_b=None, temperature=2.0))
    ref4 = jax.block_until_ready(_reference_loss(fa4, None, labels4, 2.0))
    assert jnp.allclose(loss4, ref4, rtol=1e-4, atol=1e-4), (loss4, ref4)

    print("KERNEL_OK")
</pallas_src>

<mosaic_0001>
module attributes {stable_mosaic.version = 11 : i64} {
  func.func @_contrastive_kernel(%arg0: i32, %arg1: i32, %arg2: memref<128x128xf32, #tpu.memory_space<vmem>>, %arg3: memref<128x128xf32, #tpu.memory_space<vmem>>, %arg4: memref<128x1xi32, #tpu.memory_space<vmem>>, %arg5: memref<1x128xi32, #tpu.memory_space<vmem>>, %arg6: memref<128x1xf32, #tpu.memory_space<vmem>>, %arg7: memref<128x128xf32, #tpu.memory_space<vmem>>, %arg8: memref<128x1xf32, #tpu.memory_space<vmem>>, %arg9: memref<128x1xf32, #tpu.memory_space<vmem>>, %arg10: memref<128x1xf32, #tpu.memory_space<vmem>>, %arg11: memref<128x1xf32, #tpu.memory_space<vmem>>) attributes {dimension_semantics = [#tpu.dimension_semantics<parallel>, #tpu.dimension_semantics<arbitrary>], iteration_bounds = array<i64: 1, 1>, scalar_prefetch = 0 : i64, scratch_operands = 5 : i64, tpu.core_type = #tpu.core_type<tc>, window_params = [{transform_indices = @transform_0, window_bounds = array<i64: 128, 128>}, {transform_indices = @transform_1, window_bounds = array<i64: 128, 128>}, {transform_indices = @transform_2, window_bounds = array<i64: 128, 1>}, {transform_indices = @transform_3, window_bounds = array<i64: 1, 128>}, {transform_indices = @transform_4, window_bounds = array<i64: 128, 1>}]} {
    %c0_i32 = arith.constant 0 : i32
    %0 = arith.cmpi eq, %arg1, %c0_i32 : i32
    %1 = arith.extui %0 : i1 to i32
    %c0_i32_0 = arith.constant 0 : i32
    %2 = arith.cmpi ne, %1, %c0_i32_0 : i32
    scf.if %2 {
      %c0_40 = arith.constant 0 : index
      %c0_41 = arith.constant 0 : index
      %75 = vector.load %arg2[%c0_40, %c0_41] : memref<128x128xf32, #tpu.memory_space<vmem>>, vector<128x128xf32>
      %76 = arith.mulf %75, %75 : vector<128x128xf32>
      %cst_42 = arith.constant dense<0.000000e+00> : vector<128xf32>
      %77 = vector.multi_reduction <add>, %76, %cst_42 [1] : vector<128x128xf32> to vector<128xf32>
      %78 = vector.shape_cast %77 : vector<128xf32> to vector<128x1xf32>
      %79 = math.sqrt %78 : vector<128x1xf32>
      %cst_43 = arith.constant 9.99999996E-13 : f32
      %80 = vector.broadcast %cst_43 : f32 to vector<128x1xf32>
      %81 = arith.maximumf %79, %80 : vector<128x1xf32>
      %cst_44 = arith.constant 1.000000e+00 : f32
      %82 = vector.broadcast %cst_44 : f32 to vector<128x1xf32>
      %83 = arith.divf %82, %81 : vector<128x1xf32>
      %cst_45 = arith.constant 5.000000e-01 : f32
      %84 = vector.broadcast %cst_45 : f32 to vector<128x1xf32>
      %85 = arith.mulf %83, %84 : vector<128x1xf32>
      %86 = vector.broadcast %85 : vector<128x1xf32> to vector<128x128xf32>
      %87 = arith.mulf %75, %86 : vector<128x128xf32>
      %c0_46 = arith.constant 0 : index
      %c0_47 = arith.constant 0 : index
      %88 = vector.load %arg7[%c0_46, %c0_47] : memref<128x128xf32, #tpu.memory_space<vmem>>, vector<128x128xf32>
      tpu.vector_store %arg7[%c0_46, %c0_47], %87 {strides = array<i32>} : memref<128x128xf32, #tpu.memory_space<vmem>>, vector<128x128xf32>,
      %cst_48 = arith.constant 0xFF800000 : f32
      %89 = vector.broadcast %cst_48 : f32 to vector<128x1xf32>
      %c0_49 = arith.constant 0 : index
      %c0_50 = arith.constant 0 : index
      %90 = vector.load %arg8[%c0_49, %c0_50] : memref<128x1xf32, #tpu.memory_space<vmem>>, vector<128x1xf32>
      tpu.vector_store %arg8[%c0_49, %c0_50], %89 {strides = array<i32>} : memref<128x1xf32, #tpu.memory_space<vmem>>, vector<128x1xf32>,
      %cst_51 = arith.constant 0.000000e+00 : f32
      %91 = vector.broadcast %cst_51 : f32 to vector<128x1xf32>
      %c0_52 = arith.constant 0 : index
      %c0_53 = arith.constant 0 : index
      %92 = vector.load %arg9[%c0_52, %c0_53] : memref<128x1xf32, #tpu.memory_space<vmem>>, vector<128x1xf32>
      tpu.vector_store %arg9[%c0_52, %c0_53], %91 {strides = array<i32>} : memref<128x1xf32, #tpu.memory_space<vmem>>, vector<128x1xf32>,
      %cst_54 = arith.constant 0.000000e+00 : f32
      %93 = vector.broadcast %cst_54 : f32 to vector<128x1xf32>
      %c0_55 = arith.constant 0 : index
      %c0_56 = arith.constant 0 : index
      %94 = vector.load %arg10[%c0_55, %c0_56] : memref<128x1xf32, #tpu.memory_space<vmem>>, vector<128x1xf32>
      tpu.vector_store %arg10[%c0_55, %c0_56], %93 {strides = array<i32>} : memref<128x1xf32, #tpu.memory_space<vmem>>, vector<128x1xf32>,
      %cst_57 = arith.constant 0.000000e+00 : f32
      %95 = vector.broadcast %cst_57 : f32 to vector<128x1xf32>
      %c0_58 = arith.constant 0 : index
      %c0_59 = arith.constant 0 : index
      %96 = vector.load %arg11[%c0_58, %c0_59] : memref<128x1xf32, #tpu.memory_space<vmem>>, vector<128x1xf32>
      tpu.vector_store %arg11[%c0_58, %c0_59], %95 {strides = array<i32>} : memref<128x1xf32, #tpu.memory_space<vmem>>, vector<128x1xf32>,
    } else {
    }
    %c0 = arith.constant 0 : index
    %c0_1 = arith.constant 0 : index
    %3 = vector.load %arg3[%c0, %c0_1] : memref<128x128xf32, #tpu.memory_space<vmem>>, vector<128x128xf32>
    %4 = arith.mulf %3, %3 : vector<128x128xf32>
    %cst = arith.constant dense<0.000000e+00> : vector<128xf32>
    %5 = vector.multi_reduction <add>, %4, %cst [1] : vector<128x128xf32> to vector<128xf32>
    %6 = vector.shape_cast %5 : vector<128xf32> to vector<128x1xf32>
    %7 = math.sqrt %6 : vector<128x1xf32>
    %cst_2 = arith.constant 9.99999996E-13 : f32
    %8 = vector.broadcast %cst_2 : f32 to vector<128x1xf32>
    %9 = arith.maximumf %7, %8 : vector<128x1xf32>
    %cst_3 = arith.constant 1.000000e+00 : f32
    %10 = vector.broadcast %cst_3 : f32 to vector<128x1xf32>
    %11 = arith.divf %10, %9 : vector<128x1xf32>
    %12 = vector.broadcast %11 : vector<128x1xf32> to vector<128x128xf32>
    %13 = arith.mulf %3, %12 : vector<128x128xf32>
    %c0_4 = arith.constant 0 : index
    %c0_5 = arith.constant 0 : index
    %14 = vector.load %arg7[%c0_4, %c0_5] : memref<128x128xf32, #tpu.memory_space<vmem>>, vector<128x128xf32>
    %cst_6 = arith.constant dense<0.000000e+00> : vector<128x128xf32>
    %15 = tpu.matmul %14, %13, %cst_6 {dimension_numbers = #tpu.dot_dimension_numbers<[1], [1], [0], [0], [0, 0, 1, 0], [], []>} : vector<128x128xf32>, vector<128x128xf32>, vector<128x128xf32> -> vector<128x128xf32>
    %c128_i32 = arith.constant 128 : i32
    %16 = arith.muli %arg1, %c128_i32 : i32
    %17 = tpu.iota {dimensions = array<i32: 1>} : vector<128x128xi32>
    %18 = vector.broadcast %16 : i32 to vector<128x128xi32>
    %19 = arith.addi %18, %17 : vector<128x128xi32>
    %c8_i32 = arith.constant 8 : i32
    %20 = vector.broadcast %c8_i32 : i32 to vector<128x128xi32>
    %21 = arith.cmpi slt, %19, %20 : vector<128x128xi32>
    %c128_i32_7 = arith.constant 128 : i32
    %22 = arith.muli %arg0, %c128_i32_7 : i32
    %23 = tpu.iota {dimensions = array<i32: 0>} : vector<128x128xi32>
    %24 = vector.broadcast %22 : i32 to vector<128x128xi32>
    %25 = arith.addi %24, %23 : vector<128x128xi32>
    %26 = arith.cmpi ne, %25, %19 : vector<128x128xi32>
    %27 = arith.andi %21, %26 : vector<128x128xi1>
    %c0_8 = arith.constant 0 : index
    %c0_9 = arith.constant 0 : index
    %28 = vector.load %arg4[%c0_8, %c0_9] : memref<128x1xi32, #tpu.memory_space<vmem>>, vector<128x1xi32>
    %c0_10 = arith.constant 0 : index
    %c0_11 = arith.constant 0 : index
    %29 = vector.load %arg5[%c0_10, %c0_11] : memref<1x128xi32, #tpu.memory_space<vmem>>, vector<1x128xi32>
    %30 = vector.broadcast %28 : vector<128x1xi32> to vector<128x128xi32>
    %31 = vector.broadcast %29 : vector<1x128xi32> to vector<128x128xi32>
    %32 = arith.cmpi eq, %30, %31 : vector<128x128xi32>
    %33 = arith.andi %27, %32 : vector<128x128xi1>
    %34 = arith.extui %33 : vector<128x128xi1> to vector<128x128xi32>
    %35 = arith.sitofp %34 : vector<128x128xi32> to vector<128x128xf32>
    %c0_12 = arith.constant 0 : index
    %c0_13 = arith.constant 0 : index
    %36 = vector.load %arg10[%c0_12, %c0_13] : memref<128x1xf32, #tpu.memory_space<vmem>>, vector<128x1xf32>
    %37 = arith.mulf %35, %15 : vector<128x128xf32>
    %cst_14 = arith.constant dense<0.000000e+00> : vector<128xf32>
    %38 = vector.multi_reduction <add>, %37, %cst_14 [1] : vector<128x128xf32> to vector<128xf32>
    %39 = vector.shape_cast %38 : vector<128xf32> to vector<128x1xf32>
    %40 = arith.addf %36, %39 : vector<128x1xf32>
    %c0_15 = arith.constant 0 : index
    %c0_16 = arith.constant 0 : index
    %41 = vector.load %arg10[%c0_15, %c0_16] : memref<128x1xf32, #tpu.memory_space<vmem>>, vector<128x1xf32>
    tpu.vector_store %arg10[%c0_15, %c0_16], %40 {strides = array<i32>} : memref<128x1xf32, #tpu.memory_space<vmem>>, vector<128x1xf32>,
    %c0_17 = arith.constant 0 : index
    %c0_18 = arith.constant 0 : index
    %42 = vector.load %arg11[%c0_17, %c0_18] : memref<128x1xf32, #tpu.memory_space<vmem>>, vector<128x1xf32>
    %cst_19 = arith.constant dense<0.000000e+00> : vector<128xf32>
    %43 = vector.multi_reduction <add>, %35, %cst_19 [1] : vector<128x128xf32> to vector<128xf32>
    %44 = vector.shape_cast %43 : vector<128xf32> to vector<128x1xf32>
    %45 = arith.addf %42, %44 : vector<128x1xf32>
    %c0_20 = arith.constant 0 : index
    %c0_21 = arith.constant 0 : index
    %46 = vector.load %arg11[%c0_20, %c0_21] : memref<128x1xf32, #tpu.memory_space<vmem>>, vector<128x1xf32>
    tpu.vector_store %arg11[%c0_20, %c0_21], %45 {strides = array<i32>} : memref<128x1xf32, #tpu.memory_space<vmem>>, vector<128x1xf32>,
    %cst_22 = arith.constant 0xFF800000 : f32
    %47 = vector.broadcast %cst_22 : f32 to vector<128x128xf32>
    %48 = arith.select %27, %15, %47 : vector<128x128xi1>, vector<128x128xf32>
    %c0_23 = arith.constant 0 : index
    %c0_24 = arith.constant 0 : index
    %49 = vector.load %arg8[%c0_23, %c0_24] : memref<128x1xf32, #tpu.memory_space<vmem>>, vector<128x1xf32>
    %cst_25 = arith.constant dense<0xFF800000> : vector<128xf32>
    %50 = vector.multi_reduction <maximumf>, %48, %cst_25 [1] : vector<128x128xf32> to vector<128xf32>
    %51 = vector.shape_cast %50 : vector<128xf32> to vector<128x1xf32>
    %52 = arith.maximumf %49, %51 : vector<128x1xf32>
    %cst_26 = arith.constant 0xFF800000 : f32
    %53 = vector.broadcast %cst_26 : f32 to vector<128x1xf32>
    %54 = arith.cmpf oeq, %52, %53 : vector<128x1xf32>
    %cst_27 = arith.constant 0.000000e+00 : f32
    %55 = vector.broadcast %cst_27 : f32 to vector<128x1xf32>
    %56 = arith.select %54, %55, %52 : vector<128x1xi1>, vector<128x1xf32>
    %c0_28 = arith.constant 0 : index
    %c0_29 = arith.constant 0 : index
    %57 = vector.load %arg8[%c0_28, %c0_29] : memref<128x1xf32, #tpu.memory_space<vmem>>, vector<128x1xf32>
    %58 = arith.subf %57, %56 : vector<128x1xf32>
    %59 = math.exp %58 : vector<128x1xf32>
    %60 = vector.broadcast %56 : vector<128x1xf32> to vector<128x128xf32>
    %61 = arith.subf %15, %60 : vector<128x128xf32>
    %62 = math.exp %61 : vector<128x128xf32>
    %cst_30 = arith.constant 0.000000e+00 : f32
    %63 = vector.broadcast %cst_30 : f32 to vector<128x128xf32>
    %64 = arith.select %27, %62, %63 : vector<128x128xi1>, vector<128x128xf32>
    %c0_31 = arith.constant 0 : index
    %c0_32 = arith.constant 0 : index
    %65 = vector.load %arg9[%c0_31, %c0_32] : memref<128x1xf32, #tpu.memory_space<vmem>>, vector<128x1xf32>
    %66 = arith.mulf %59, %65 : vector<128x1xf32>
    %cst_33 = arith.constant dense<0.000000e+00> : vector<128xf32>
    %67 = vector.multi_reduction <add>, %64, %cst_33 [1] : vector<128x128xf32> to vector<128xf32>
    %68 = vector.shape_cast %67 : vector<128xf32> to vector<128x1xf32>
    %69 = arith.addf %66, %68 : vector<128x1xf32>
    %c0_34 = arith.constant 0 : index
    %c0_35 = arith.constant 0 : index
    %70 = vector.load %arg9[%c0_34, %c0_35] : memref<128x1xf32, #tpu.memory_space<vmem>>, vector<128x1xf32>
    tpu.vector_store %arg9[%c0_34, %c0_35], %69 {strides = array<i32>} : memref<128x1xf32, #tpu.memory_space<vmem>>, vector<128x1xf32>,
    %c0_36 = arith.constant 0 : index
    %c0_37 = arith.constant 0 : index
    %71 = vector.load %arg8[%c0_36, %c0_37] : memref<128x1xf32, #tpu.memory_space<vmem>>, vector<128x1xf32>
    tpu.vector_store %arg8[%c0_36, %c0_37], %52 {strides = array<i32>} : memref<128x1xf32, #tpu.memory_space<vmem>>, vector<128x1xf32>,
    %c0_i32_38 = arith.constant 0 : i32
    %72 = arith.cmpi eq, %arg1, %c0_i32_38 : i32
    %73 = arith.extui %72 : i1 to i32
    %c0_i32_39 = arith.constant 0 : i32
    %74 = arith.cmpi ne, %73, %c0_i32_39 : i32
    scf.if %74 {
      %c0_40 = arith.constant 0 : index
      %c0_41 = arith.constant 0 : index
      %75 = vector.load %arg11[%c0_40, %c0_41] : memref<128x1xf32, #tpu.memory_space<vmem>>, vector<128x1xf32>
      %cst_42 = arith.constant 0.000000e+00 : f32
      %76 = vector.broadcast %cst_42 : f32 to vector<128x1xf32>
      %77 = arith.cmpf oeq, %75, %76 : vector<128x1xf32>
      %cst_43 = arith.constant 1.000000e+00 : f32
      %78 = vector.broadcast %cst_43 : f32 to vector<128x1xf32>
      %79 = arith.select %77, %78, %75 : vector<128x1xi1>, vector<128x1xf32>
      %c0_44 = arith.constant 0 : index
      %c0_45 = arith.constant 0 : index
      %80 = vector.load %arg8[%c0_44, %c0_45] : memref<128x1xf32, #tpu.memory_space<vmem>>, vector<128x1xf32>
      %c0_46 = arith.constant 0 : index
      %c0_47 = arith.constant 0 : index
      %81 = vector.load %arg9[%c0_46, %c0_47] : memref<128x1xf32, #tpu.memory_space<vmem>>, vector<128x1xf32>
      %82 = math.log %81 : vector<128x1xf32>
      %83 = arith.addf %80, %82 : vector<128x1xf32>
      %c0_48 = arith.constant 0 : index
      %c0_49 = arith.constant 0 : index
      %84 = vector.load %arg10[%c0_48, %c0_49] : memref<128x1xf32, #tpu.memory_space<vmem>>, vector<128x1xf32>
      %85 = arith.mulf %75, %83 : vector<128x1xf32>
      %86 = arith.subf %84, %85 : vector<128x1xf32>
      %87 = arith.divf %86, %79 : vector<128x1xf32>
      %c0_50 = arith.constant 0 : index
      %c0_51 = arith.constant 0 : index
      %88 = vector.load %arg6[%c0_50, %c0_51] : memref<128x1xf32, #tpu.memory_space<vmem>>, vector<128x1xf32>
      tpu.vector_store %arg6[%c0_50, %c0_51], %87 {strides = array<i32>} : memref<128x1xf32, #tpu.memory_space<vmem>>, vector<128x1xf32>,
    } else {
    }
    return
  }
  func.func @transform_0(%arg0: i32, %arg1: i32) -> (i32, i32) {
    %c0_i32 = arith.constant 0 : i32
    %c0_i32_0 = arith.constant 0 : i32
    return %arg0, %c0_i32 : i32, i32
  }
  func.func @transform_1(%arg0: i32, %arg1: i32) -> (i32, i32) {
    %c0_i32 = arith.constant 0 : i32
    %c0_i32_0 = arith.constant 0 : i32
    return %arg1, %c0_i32 : i32, i32
  }
  func.func @transform_2(%arg0: i32, %arg1: i32) -> (i32, i32) {
    %c0_i32 = arith.constant 0 : i32
    %c0_i32_0 = arith.constant 0 : i32
    return %arg0, %c0_i32 : i32, i32
  }
  func.func @transform_3(%arg0: i32, %arg1: i32) -> (i32, i32) {
    %c0_i32 = arith.constant 0 : i32
    %c0_i32_0 = arith.constant 0 : i32
    return %c0_i32, %arg1 : i32, i32
  }
  func.func @transform_4(%arg0: i32, %arg1: i32) -> (i32, i32) {
    %c0_i32 = arith.constant 0 : i32
    %c0_i32_0 = arith.constant 0 : i32
    return %arg0, %c0_i32 : i32, i32
  }
}

</mosaic_0001>

<bundles_post_ra>
// kernel: tpu_custom_call.1
= control target key start
LH: loop header
LB: loop body
LE: loop exit
PB: predicated region body
PF: predicated region fallthrough
CT: control target
= control target key end

     0   :  { %9 = vsyncpa [#allocation8], 0  ;;  %s2259_s15 = smov [#allocation7]   ;;  %s3867_s0 = inlined_call_operand.vmem [shape: f32[128,128], index: 0, kind: input, shape index: {}]   ;;  %s3868_s1 = inlined_call_operand.hbm [shape: f32[128,128], index: 1, kind: input, shape index: {}]   ;;  %s3869_s2 = inlined_call_operand.vmem [shape: s32[128,1], index: 2, kind: input, shape index: {}]   ;;  %s3870_s3 = inlined_call_operand.vmem [shape: s32[1,128], index: 3, kind: input, shape index: {}]   ;;  %s3871_s4 = inlined_call_operand.vmem [shape: f32[128,1], index: 4, kind: output, shape index: {}]  }
   0x1   :  { %s17_s16 = sshll.u32 %s2259_s15, 4  ;;  %s2235_s19 = scalar_lea.hbm %s3868_s1, 2048  ;;  %s18_s16 = int_to_ptr.vmem [resolvable:$true] %s17_s16 }
   0x2   :  { %p2236_p0 = scmp.ne.s32.totalorder %s3868_s1, %s2235_s19  ;;  %p2239_p1 = scmp.lt.u32.totalorder %s2235_s19, %s3868_s1 }
   0x4   :  { %p2241_p2 = pnand %p2239_p1, %p2236_p0 }
   0x6   :  { %2244 = shalt.err (!%p2241_p2)
}
   0x7   :  { %s2245_s24 = scalar_lea.vmem %s18_s16, 2048  ;;  %p2250_p4 = scmp.lt.s32.totalorder %s18_s16, %s18_s16 }
   0x8   :  { %p2246_p3 = scmp.ne.s32.totalorder %s18_s16, %s2245_s24  ;;  %p2251_p5 = scmp.lt.s32.totalorder %s2245_s24, %s2245_s24 }
   0xa   :  { %p2252_p6 = por %p2251_p5, %p2250_p4 }
   0xc   :  { %p2253_p7 = pnand %p2252_p6, %p2246_p3 }
   0xe   :  { %2256 = shalt.err (!%p2253_p7)
}
   0xf   :  { %s2260_s25 = smov 128   ;;  %s2261_s26 = smov 8  }
  0x10   :  { %23 = dma.hbm_to_vmem [thread:$0]  %s3868_s1, 2048, %s18_s16, [#allocation8], %s2260_s25, %s2260_s25, %s2261_s26  }
  0x11   :  { %2257 = dma.done.wait [#allocation8], 2048  }
  0x12   :  { %2258 = vsyncadd [#allocation8], 4294965248  ;;  %v2302_v0 = vld [vmem:[#allocation7 + $0x10] sm:$0xff]  ;;  %v2304_v1 = vld [vmem:[#allocation7] sm:$0xff] }
  0x13   :  { %v2306_v2 = vld [vmem:[#allocation7 + $0x18] sm:$0xff]  ;;  %v390_v3 = vmul.f32 %v2302_v0, %v2302_v0  ;;  %v388_v4 = vmul.f32 %v2304_v1, %v2304_v1  ;;  %v2312_v5 = vld [vmem:[#allocation7 + $0x8] sm:$0xff]  ;;  %v2320_v9 = vld [vmem:[#allocation7 + $0x20] sm:$0xff] }
  0x14   :  { %v391_v6 = vmul.f32 %v2306_v2, %v2306_v2  ;;  %v389_v7 = vmul.f32 %v2312_v5, %v2312_v5  ;;  %v2318_v8 = vld [vmem:[#allocation7 + $0x28] sm:$0xff]  ;;  %v392_v11 = vmul.f32 %v2320_v9, %v2320_v9  ;;  %v2326_v12 = vld [vmem:[#allocation7 + $0x38] sm:$0xff]  ;;  %v2328_v13 = vld [vmem:[#allocation7 + $0x30] sm:$0xff] }
  0x15   :  { %408 = vadd.xlane.f32.xlu1 %v390_v3  ;;  %404 = vadd.xlane.f32.xlu0 %v388_v4  ;;  %v393_v10 = vmul.f32 %v2318_v8, %v2318_v8  ;;  %v395_v14 = vmul.f32 %v2326_v12, %v2326_v12  ;;  %v394_v15 = vmul.f32 %v2328_v13, %v2328_v13  ;;  %v2334_v16 = vld [vmem:[#allocation7 + $0x48] sm:$0xff]  ;;  %v2336_v17 = vld [vmem:[#allocation7 + $0x40] sm:$0xff]  ;;  %v2342_v20 = vld [vmem:[#allocation7 + $0x58] sm:$0xff]  ;;  %v2262_v4 = vmov 0  }
  0x16   :  { %v397_v18 = vmul.f32 %v2334_v16, %v2334_v16  ;;  %v396_v19 = vmul.f32 %v2336_v17, %v2336_v17  ;;  %v2344_v21 = vld [vmem:[#allocation7 + $0x50] sm:$0xff]  ;;  %v399_v22 = vmul.f32 %v2342_v20, %v2342_v20  ;;  %v2350_v24 = vld [vmem:[#allocation7 + $0x68] sm:$0xff]  ;;  %v2352_v25 = vld [vmem:[#allocation7 + $0x60] sm:$0xff]  ;;  %1964 = vset.pattern.permute.xlu1 %v2262_v4  ;;  %1963 = vset.pattern.permute.xlu0 %v2262_v4 }
  0x17   :  { %v398_v23 = vmul.f32 %v2344_v21, %v2344_v21  ;;  %v401_v26 = vmul.f32 %v2350_v24, %v2350_v24  ;;  %v400_v27 = vmul.f32 %v2352_v25, %v2352_v25  ;;  %v2358_v28 = vld [vmem:[#allocation7 + $0x78] sm:$0xff]  ;;  %v2360_v29 = vld [vmem:[#allocation7 + $0x70] sm:$0xff]  ;;  %v2369_v32 = vld [vmem:[%s3867_s0 + $0x40] sm:$0xff] }
  0x18   :  { %v403_v30 = vmul.f32 %v2358_v28, %v2358_v28  ;;  %v402_v31 = vmul.f32 %v2360_v29, %v2360_v29  ;;  %v2374_v33 = vld [vmem:[%s3867_s0] sm:$0xff]  ;;  %v59_v34 = vmul.f32 %v2369_v32, %v2369_v32  ;;  %v44_v36 = vld [vmem:[%s3867_s0 + $0x48] sm:$0xff]  ;;  %v37_v40 = vld [vmem:[%s3867_s0 + $0x10] sm:$0xff] }
  0x19   :  { %410 = vadd.xlane.f32.xlu1 %v391_v6  ;;  %406 = vadd.xlane.f32.xlu0 %v389_v7  ;;  %v51_v35 = vmul.f32 %v2374_v33, %v2374_v33  ;;  %v36_v37 = vld [vmem:[%s3867_s0 + $0x8] sm:$0xff]  ;;  %v60_v38 = vmul.f32 %v44_v36, %v44_v36  ;;  %v45_v41 = vld [vmem:[%s3867_s0 + $0x50] sm:$0xff]  ;;  %v53_v42 = vmul.f32 %v37_v40, %v37_v40  ;;  %v38_v44 = vld [vmem:[%s3867_s0 + $0x18] sm:$0xff] }
  0x1a   :  { %v52_v39 = vmul.f32 %v36_v37, %v36_v37  ;;  %v61_v43 = vmul.f32 %v45_v41, %v45_v41  ;;  %v46_v45 = vld [vmem:[%s3867_s0 + $0x58] sm:$0xff]  ;;  %v54_v46 = vmul.f32 %v38_v44, %v38_v44  ;;  %v39_v48 = vld [vmem:[%s3867_s0 + $0x20] sm:$0xff]  ;;  %v40_v52 = vld [vmem:[%s3867_s0 + $0x28] sm:$0xff] }
  0x1b   :  { %v62_v47 = vmul.f32 %v46_v45, %v46_v45  ;;  %v47_v49 = vld [vmem:[%s3867_s0 + $0x60] sm:$0xff]  ;;  %v55_v50 = vmul.f32 %v39_v48, %v39_v48  ;;  %v48_v53 = vld [vmem:[%s3867_s0 + $0x68] sm:$0xff]  ;;  %v56_v54 = vmul.f32 %v40_v52, %v40_v52  ;;  %v41_v56 = vld [vmem:[%s3867_s0 + $0x30] sm:$0xff] }
  0x1c   :  { %v63_v51 = vmul.f32 %v47_v49, %v47_v49  ;;  %v64_v55 = vmul.f32 %v48_v53, %v48_v53  ;;  %v49_v57 = vld [vmem:[%s3867_s0 + $0x70] sm:$0xff]  ;;  %v57_v58 = vmul.f32 %v41_v56, %v41_v56  ;;  %v42_v60 = vld [vmem:[%s3867_s0 + $0x38] sm:$0xff]  ;;  %v847_v3 = vld [vmem:[%s3869_s2 + $0x8] sm:$0xff] }
  0x1d   :  { %414 = vadd.xlane.f32.xlu1 %v393_v10  ;;  %412 = vadd.xlane.f32.xlu0 %v392_v11  ;;  %v65_v59 = vmul.f32 %v49_v57, %v49_v57  ;;  %v50_v61 = vld [vmem:[%s3867_s0 + $0x78] sm:$0xff]  ;;  %v58_v62 = vmul.f32 %v42_v60, %v42_v60  ;;  %v846_v6 = vld [vmem:[%s3869_s2] sm:$0xff]  ;;  %v848_v7 = vld [vmem:[%s3869_s2 + $0x10] sm:$0xff] }
  0x1e   :  { %v66_v63 = vmul.f32 %v50_v61, %v50_v61  ;;  %v849_v10 = vld [vmem:[%s3869_s2 + $0x18] sm:$0xff]  ;;  %v850_v11 = vld [vmem:[%s3869_s2 + $0x20] sm:$0xff]  ;;  %v856_v56 = vld [vmem:[%s3869_s2 + $0x50] sm:$0xff] }
  0x1f   :  { %v854_v41 = vld [vmem:[%s3869_s2 + $0x40] sm:$0xff] }
  0x21   :  { %418 = vadd.xlane.f32.xlu1 %v395_v14  ;;  %416 = vadd.xlane.f32.xlu0 %v394_v15 }
  0x25   :  { %422 = vadd.xlane.f32.xlu1 %v397_v18  ;;  %420 = vadd.xlane.f32.xlu0 %v396_v19  ;;  %v851_v18 = vld [vmem:[%s3869_s2 + $0x28] sm:$0xff] }
  0x29   :  { %426 = vadd.xlane.f32.xlu1 %v399_v22  ;;  %424 = vadd.xlane.f32.xlu0 %v398_v23  ;;  %v852_v23 = vld [vmem:[%s3869_s2 + $0x30] sm:$0xff] }
  0x2d   :  { %430 = vadd.xlane.f32.xlu1 %v401_v26  ;;  %428 = vadd.xlane.f32.xlu0 %v400_v27 }
  0x31   :  { %434 = vadd.xlane.f32.xlu1 %v403_v30  ;;  %432 = vadd.xlane.f32.xlu0 %v402_v31  ;;  %v853_v30 = vld [vmem:[%s3869_s2 + $0x38] sm:$0xff] }
  0x35   :  { %83 = vadd.xlane.f32.xlu1 %v59_v34  ;;  %67 = vadd.xlane.f32.xlu0 %v51_v35 }
  0x39   :  { %85 = vadd.xlane.f32.xlu1 %v60_v38  ;;  %69 = vadd.xlane.f32.xlu0 %v52_v39 }
  0x3d   :  { %71 = vadd.xlane.f32.xlu0 %v53_v42  ;;  %87 = vadd.xlane.f32.xlu1 %v61_v43 }
  0x41   :  { %73 = vadd.xlane.f32.xlu0 %v54_v46  ;;  %89 = vadd.xlane.f32.xlu1 %v62_v47 }
  0x45   :  { %75 = vadd.xlane.f32.xlu0 %v55_v50  ;;  %91 = vadd.xlane.f32.xlu1 %v63_v51 }
  0x49   :  { %77 = vadd.xlane.f32.xlu0 %v56_v54  ;;  %93 = vadd.xlane.f32.xlu1 %v64_v55 }
  0x4d   :  { %79 = vadd.xlane.f32.xlu0 %v57_v58  ;;  %95 = vadd.xlane.f32.xlu1 %v65_v59 }
  0x51   :  { %81 = vadd.xlane.f32.xlu0 %v58_v62  ;;  %97 = vadd.xlane.f32.xlu1 %v66_v63 }
  0x62   :  { %867 = vperm.xlu1 %1964, %v847_v3  }
  0x66   :  { %870 = vperm.xlu1 %1964, %v848_v7  }
  0x67   :  { %864 = vperm.xlu0 %1963, %v846_v6  }
  0x6a   :  { %873 = vperm.xlu1 %1964, %v849_v10  }
  0x6e   :  { %876 = vperm.xlu1 %1964, %v850_v11  }
  0x72   :  { %879 = vperm.xlu1 %1964, %v851_v18  }
  0x76   :  { %882 = vperm.xlu1 %1964, %v852_v23  }
  0x7a   :  { %885 = vperm.xlu1 %1964, %v853_v30  }
  0x7e   :  { %888 = vperm.xlu1 %1964, %v854_v41  }
  0x82   :  { %894 = vperm.xlu1 %1964, %v856_v56  }
  0xa2   :  { %v409_v14 = vpop.xlane.xlu1 %408  ;;  %v405_v15 = vpop.xlane.xlu0 %404 }
  0xa3   :  { %1965 = vrsqrt.f32 %v409_v14  ;;  %vm452_vm0 = vcmp.eq.f32.partialorder %v409_v14, inf  ;;  %vm454_vm1 = vcmp.eq.f32.partialorder %v409_v14, 0.0  ;;  %v455_v36 = vand.u32 2147483648, %v409_v14 }
  0xa4   :  { %1967 = vrsqrt.f32 %v405_v15  ;;  %vm438_vm2 = vcmp.eq.f32.partialorder %v405_v15, inf  ;;  %vm440_vm3 = vcmp.eq.f32.partialorder %v405_v15, 0.0  ;;  %v441_v40 = vand.u32 2147483648, %v405_v15 }
  0xa6   :  { %v411_v19 = vpop.xlane.xlu1 %410  ;;  %v407_v22 = vpop.xlane.xlu0 %406 }
  0xa7   :  { %1969 = vrsqrt.f32 %v411_v19  ;;  %vm459_vm4 = vcmp.eq.f32.partialorder %v411_v19, inf  ;;  %vm461_vm5 = vcmp.eq.f32.partialorder %v411_v19, 0.0  ;;  %v462_v43 = vand.u32 2147483648, %v411_v19 }
  0xa8   :  { %1971 = vrsqrt.f32 %v407_v22  ;;  %vm445_vm6 = vcmp.eq.f32.partialorder %v407_v22, inf  ;;  %vm447_vm7 = vcmp.eq.f32.partialorder %v407_v22, 0.0  ;;  %v448_v51 = vand.u32 2147483648, %v407_v22 }
  0xaa   :  { %v2443_v26 = vpop.xlane.xlu1 %414  ;;  %v2445_v27 = vpop.xlane.xlu0 %412 }
  0xab   :  { %1973 = vrsqrt.f32 %v2443_v26  ;;  %vm473_vm8 = vcmp.eq.f32.partialorder %v2443_v26, inf  ;;  %vm475_vm9 = vcmp.eq.f32.partialorder %v2443_v26, 0.0  ;;  %v476_v58 = vand.u32 2147483648, %v2443_v26 }
  0xac   :  { %1975 = vrsqrt.f32 %v2445_v27  ;;  %vm466_vm10 = vcmp.eq.f32.partialorder %v2445_v27, inf  ;;  %v469_v62 = vand.u32 2147483648, %v2445_v27  ;;  %vm468_vm11 = vcmp.eq.f32.partialorder %v2445_v27, 0.0 }
  0xad   :  { %v1966_v31 = vpop.eup %1965 }
  0xae   :  { %v1968_v34 = vpop.eup %1967  ;;  %v451_v35 = vmul.f32 %v1966_v31, %v409_v14  ;;  %v2452_v37 = vpop.xlane.xlu1 %418 }
  0xaf   :  { %v2454_v38 = vpop.xlane.xlu0 %416  ;;  %v437_v39 = vmul.f32 %v1968_v34, %v405_v15  ;;  %1977 = vrsqrt.f32 %v2452_v37  ;;  %vm487_vm12 = vcmp.eq.f32.partialorder %v2452_v37, inf  ;;  %v490_v18 = vand.u32 2147483648, %v2452_v37 }
  0xb0   :  { %v453_v42 = vsel %vm452_vm0, %v409_v14, %v451_v35  ;;  %1979 = vrsqrt.f32 %v2454_v38  ;;  %vm480_vm13 = vcmp.eq.f32.partialorder %v2454_v38, inf  ;;  %v483_v41 = vand.u32 2147483648, %v2454_v38 }
  0xb1   :  { %v1970_v44 = vpop.eup %1969  ;;  %v456_v45 = vsel %vm454_vm1, %v455_v36, %v453_v42  ;;  %v439_v46 = vsel %vm438_vm2, %v405_v15, %v437_v39  ;;  %vm489_vm14 = vcmp.eq.f32.partialorder %v2452_v37, 0.0  ;;  %vm482_vm15 = vcmp.eq.f32.partialorder %v2454_v38, 0.0 }
  0xb2   :  { %v1972_v47 = vpop.eup %1971  ;;  %v550_v48 = vmax.f32 %v456_v45, 1e-12  ;;  %v442_v49 = vsel %vm440_vm3, %v441_v40, %v439_v46  ;;  %v458_v50 = vmul.f32 %v1970_v44, %v411_v19  ;;  %v2464_v52 = vpop.xlane.xlu1 %422 }
  0xb3   :  { %v2466_v53 = vpop.xlane.xlu0 %420  ;;  %v548_v54 = vmax.f32 %v442_v49, 1e-12  ;;  %v444_v55 = vmul.f32 %v1972_v47, %v407_v22  ;;  %1981 = vrsqrt.f32 %v2464_v52  ;;  %vm501_vm0 = vcmp.eq.f32.partialorder %v2464_v52, inf }
  0xb4   :  { %v460_v57 = vsel %vm459_vm4, %v411_v19, %v458_v50  ;;  %1983 = vrcp.f32 %v550_v48  ;;  %vm503_vm1 = vcmp.eq.f32.partialorder %v2464_v52, 0.0  ;;  %v504_v45 = vand.u32 2147483648, %v2464_v52 }
  0xb5   :  { %v1974_v59 = vpop.eup %1973  ;;  %v463_v60 = vsel %vm461_vm5, %v462_v43, %v460_v57  ;;  %v446_v61 = vsel %vm445_vm6, %v407_v22, %v444_v55  ;;  %1985 = vrsqrt.f32 %v2466_v53  ;;  %vm494_vm2 = vcmp.eq.f32.partialorder %v2466_v53, inf }
  0xb6   :  { %v1976_v63 = vpop.eup %1975  ;;  %v551_v3 = vmax.f32 %v463_v60, 1e-12  ;;  %v449_v4 = vsel %vm447_vm7, %v448_v51, %v446_v61  ;;  %v472_v6 = vmul.f32 %v1974_v59, %v2443_v26  ;;  %v2483_v7 = vpop.xlane.xlu1 %426  ;;  %1987 = vrcp.f32 %v548_v54 }
  0xb7   :  { %v2485_v10 = vpop.xlane.xlu0 %424  ;;  %v549_v11 = vmax.f32 %v449_v4, 1e-12  ;;  %v465_v14 = vmul.f32 %v1976_v63, %v2445_v27  ;;  %vm496_vm3 = vcmp.eq.f32.partialorder %v2466_v53, 0.0  ;;  %vm515_vm4 = vcmp.eq.f32.partialorder %v2483_v7, inf }
  0xb8   :  { %1989 = vrcp.f32 %v551_v3  ;;  %v474_v15 = vsel %vm473_vm8, %v2443_v26, %v472_v6  ;;  %vm517_vm5 = vcmp.eq.f32.partialorder %v2483_v7, 0.0  ;;  %v518_v54 = vand.u32 2147483648, %v2483_v7 }
  0xb9   :  { %v1978_v19 = vpop.eup %1977  ;;  %1991 = vrcp.f32 %v549_v11  ;;  %v477_v22 = vsel %vm475_vm9, %v476_v58, %v474_v15  ;;  %v467_v23 = vsel %vm466_vm10, %v2445_v27, %v465_v14  ;;  %vm508_vm6 = vcmp.eq.f32.partialorder %v2485_v10, inf }
  0xba   :  { %v1980_v30 = vpop.eup %1979  ;;  %v553_v31 = vmax.f32 %v477_v22, 1e-12  ;;  %v470_v34 = vsel %vm468_vm11, %v469_v62, %v467_v23  ;;  %v486_v35 = vmul.f32 %v1978_v19, %v2452_v37  ;;  %1993 = vrsqrt.f32 %v2483_v7  ;;  %v2502_v36 = vpop.xlane.xlu1 %430 }
  0xbb   :  { %v2504_v39 = vpop.xlane.xlu0 %428  ;;  %v552_v40 = vmax.f32 %v470_v34, 1e-12  ;;  %v479_v26 = vmul.f32 %v1980_v30, %v2454_v38  ;;  %1995 = vrsqrt.f32 %v2485_v10  ;;  %vm510_vm7 = vcmp.eq.f32.partialorder %v2485_v10, 0.0 }
  0xbc   :  { %1997 = vrcp.f32 %v553_v31  ;;  %v488_v27 = vsel %vm487_vm12, %v2452_v37, %v486_v35  ;;  %v511_v57 = vand.u32 2147483648, %v2485_v10  ;;  %vm529_vm8 = vcmp.eq.f32.partialorder %v2502_v36, inf }
  0xbd   :  { %v1982_v42 = vpop.eup %1981  ;;  %1999 = vrcp.f32 %v552_v40  ;;  %v481_v43 = vsel %vm480_vm13, %v2454_v38, %v479_v26  ;;  %v491_v48 = vsel %vm489_vm14, %v490_v18, %v488_v27  ;;  %v497_v38 = vand.u32 2147483648, %v2466_v53 }
  0xbe   :  { %v500_v44 = vmul.f32 %v1982_v42, %v2464_v52  ;;  %2001 = vrsqrt.f32 %v2502_v36  ;;  %v2523_v37 = vpop.xlane.xlu1 %434  ;;  %v1984_v47 = vpop.eup %1983  ;;  %v484_v49 = vsel %vm482_vm15, %v483_v41, %v481_v43  ;;  %v555_v59 = vmax.f32 %v491_v48, 1e-12 }
  0xbf   :  { %v2525_v46 = vpop.xlane.xlu0 %432  ;;  %v1986_v50 = vpop.eup %1985  ;;  %v554_v60 = vmax.f32 %v484_v49, 1e-12  ;;  %2003 = vrsqrt.f32 %v2504_v39  ;;  %vm531_vm9 = vcmp.eq.f32.partialorder %v2502_v36, 0.0  ;;  %v532_v22 = vand.u32 2147483648, %v2502_v36 }
  0xc0   :  { %v502_v51 = vsel %vm501_vm0, %v2464_v52, %v500_v44  ;;  %v1988_v55 = vpop.eup %1987  ;;  %v493_v56 = vmul.f32 %v1986_v50, %v2466_v53  ;;  %2005 = vrsqrt.f32 %v2523_v37  ;;  %v598_v23 = vmul.f32 %v1984_v47, %v2302_v0 }
  0xc1   :  { %v505_v3 = vsel %vm503_vm1, %v504_v45, %v502_v51  ;;  %v596_v14 = vmul.f32 %v1988_v55, %v2304_v1  ;;  %2007 = vrsqrt.f32 %v2525_v46  ;;  %vm522_vm10 = vcmp.eq.f32.partialorder %v2504_v39, inf }
  0xc2   :  { %v1990_v58 = vpop.eup %1989  ;;  %v2539_v61 = vpop.xlane.xlu1 %83  ;;  %v495_v4 = vsel %vm494_vm2, %v2466_v53, %v493_v56  ;;  %2009 = vrcp.f32 %v555_v59  ;;  %v557_v31 = vmax.f32 %v505_v3, 1e-12  ;;  %vm524_vm11 = vcmp.eq.f32.partialorder %v2504_v39, 0.0 }
  0xc3   :  { %v2541_v62 = vpop.xlane.xlu0 %67  ;;  %v1992_v63 = vpop.eup %1991  ;;  %v498_v11 = vsel %vm496_vm3, %v497_v38, %v495_v4  ;;  %v599_v18 = vmul.f32 %v1990_v58, %v2306_v2  ;;  %2011 = vrcp.f32 %v554_v60  ;;  %v525_v45 = vand.u32 2147483648, %v2504_v39 }
  0xc4   :  { %v1994_v6 = vpop.eup %1993  ;;  %v597_v15 = vmul.f32 %v1992_v63, %v2312_v5  ;;  %v556_v35 = vmax.f32 %v498_v11, 1e-12  ;;  %2013 = vrsqrt.f32 %v2539_v61  ;;  %vm543_vm12 = vcmp.eq.f32.partialorder %v2523_v37, inf }
  0xc5   :  { %v1996_v52 = vpop.eup %1995  ;;  %v514_v19 = vmul.f32 %v1994_v6, %v2483_v7  ;;  %v1913_v27 = vpack.c.bf16 %v599_v18, %v598_v23  ;;  %2015 = vrsqrt.f32 %v2541_v62  ;;  %vm545_vm13 = vcmp.eq.f32.partialorder %v2523_v37, 0.0 }
  0xc6   :  { %v1998_v30 = vpop.eup %1997  ;;  %v507_v53 = vmul.f32 %v1996_v52, %v2485_v10  ;;  %v1909_v34 = vpack.c.bf16 %v597_v15, %v596_v14  ;;  %v2560_v1 = vpop.xlane.xlu1 %85  ;;  %2017 = vrcp.f32 %v557_v31  ;;  %vm536_vm14 = vcmp.eq.f32.partialorder %v2525_v46, inf }
  0xc7   :  { %v2562_v5 = vpop.xlane.xlu0 %69  ;;  %v2000_v2 = vpop.eup %1999  ;;  %v516_v40 = vsel %vm515_vm4, %v2483_v7, %v514_v19  ;;  %2019 = vrcp.f32 %v556_v35  ;;  %v601_v38 = vmul.f32 %v1998_v30, %v2318_v8  ;;  %vm538_vm15 = vcmp.eq.f32.partialorder %v2525_v46, 0.0 }
  0xc8   :  { %v2002_v0 = vpop.eup %2001  ;;  %v519_v26 = vsel %vm517_vm5, %v518_v54, %v516_v40  ;;  %v509_v41 = vsel %vm508_vm6, %v2485_v10, %v507_v53  ;;  %1910 = vmatprep.subr.bf16.mxu0 %v1909_v34  ;;  %1941 = vmatprep.subr.bf16.mxu1 %v1909_v34  ;;  %v600_v49 = vmul.f32 %v2000_v2, %v2320_v9  ;;  %v539_v63 = vand.u32 2147483648, %v2525_v46 }
  0xc9   :  { %v559_v42 = vmax.f32 %v519_v26, 1e-12  ;;  %v512_v43 = vsel %vm510_vm7, %v511_v57, %v509_v41  ;;  %1912 = vmatpush3.bf16.xpose.msra.mxu0 %v1909_v34  ;;  %1949 = vmatpush3.bf16.xpose.msra.mxu1 %v1909_v34  ;;  %v528_v44 = vmul.f32 %v2002_v0, %v2502_v36  ;;  %v2004_v50 = vpop.eup %2003  ;;  %v546_v57 = vand.u32 2147483648, %v2523_v37 }
  0xca   :  { %v558_v7 = vmax.f32 %v512_v43, 1e-12  ;;  %1914 = vmatprep.subr.bf16.mxu0 %v1913_v27  ;;  %1942 = vmatprep.subr.bf16.mxu1 %v1913_v27  ;;  %v2582_v48 = vpop.xlane.xlu1 %87  ;;  %v2006_v54 = vpop.eup %2005  ;;  %v521_v56 = vmul.f32 %v2004_v50, %v2504_v39  ;;  %v1917_v60 = vpack.c.bf16 %v601_v38, %v600_v49  ;;  %vm101_vm0 = vcmp.eq.f32.partialorder %v2541_v62, inf }
  0xcb   :  { %v2580_v47 = vpop.xlane.xlu0 %71  ;;  %v530_v10 = vsel %vm529_vm8, %v2502_v36, %v528_v44  ;;  %2021 = vrcp.f32 %v559_v42  ;;  %v542_v8 = vmul.f32 %v2006_v54, %v2523_v37  ;;  %v2008_v58 = vpop.eup %2007  ;;  %vm103_vm1 = vcmp.eq.f32.partialorder %v2541_v62, 0.0 }
  0xcc   :  { %v533_v51 = vsel %vm531_vm9, %v532_v22, %v530_v10  ;;  %2023 = vrsqrt.f32 %v2562_v5  ;;  %v523_v59 = vsel %vm522_vm10, %v2504_v39, %v521_v56  ;;  %v2010_v3 = vpop.eup %2009  ;;  %v535_v11 = vmul.f32 %v2008_v58, %v2525_v46 }
  0xcd   :  { %v561_v55 = vmax.f32 %v533_v51, 1e-12  ;;  %2025 = vrcp.f32 %v558_v7  ;;  %v526_v4 = vsel %vm524_vm11, %v525_v45, %v523_v59  ;;  %v544_v6 = vsel %vm543_vm12, %v2523_v37, %v542_v8  ;;  %v2012_v14 = vpop.eup %2011 }
  0xce   :  { %v2601_v36 = vpop.xlane.xlu1 %89  ;;  %2027 = vrsqrt.f32 %v2560_v1  ;;  %v560_v15 = vmax.f32 %v526_v4, 1e-12  ;;  %v547_v18 = vsel %vm545_vm13, %v546_v57, %v544_v6  ;;  %v2014_v52 = vpop.eup %2013  ;;  %v537_v39 = vsel %vm536_vm14, %v2525_v46, %v535_v11 }
  0xcf   :  { %v2599_v9 = vpop.xlane.xlu0 %73  ;;  %2029 = vrsqrt.f32 %v2580_v47  ;;  %v563_v19 = vmax.f32 %v547_v18, 1e-12  ;;  %v2016_v30 = vpop.eup %2015  ;;  %v540_v37 = vsel %vm538_vm15, %v539_v63, %v537_v39  ;;  %v603_v31 = vmul.f32 %v2010_v3, %v2326_v12 }
  0xd0   :  { %2031 = vrcp.f32 %v561_v55  ;;  %v2018_v53 = vpop.eup %2017  ;;  %v602_v34 = vmul.f32 %v2012_v14, %v2328_v13  ;;  %v100_v2 = vmul.f32 %v2016_v30, %v2541_v62  ;;  %v104_v35 = vand.u32 2147483648, %v2541_v62 }
  0xd1   :  { %1916 = vmatpush3.bf16.xpose.msra.mxu0 %v1913_v27  ;;  %1950 = vmatpush3.bf16.xpose.msra.mxu1 %v1913_v27  ;;  %2033 = vrsqrt.f32 %v2582_v48  ;;  %v2020_v40 = vpop.eup %2019  ;;  %v562_v0 = vmax.f32 %v540_v37, 1e-12  ;;  %v156_v46 = vmul.f32 %v2014_v52, %v2539_v61  ;;  %vm157_vm2 = vcmp.eq.f32.partialorder %v2539_v61, inf }
  0xd2   :  { %1918 = vmatprep.subr.bf16.mxu0 %v1917_v60  ;;  %1943 = vmatprep.subr.bf16.mxu1 %v1917_v60  ;;  %v2623_v23 = vpop.xlane.xlu1 %91  ;;  %2035 = vrsqrt.f32 %v2599_v9  ;;  %v102_v13 = vsel %vm101_vm0, %v2541_v62, %v100_v2  ;;  %v160_v27 = vand.u32 2147483648, %v2539_v61  ;;  %vm159_vm3 = vcmp.eq.f32.partialorder %v2539_v61, 0.0 }
  0xd3   :  { %v2621_v22 = vpop.xlane.xlu0 %75  ;;  %2037 = vrsqrt.f32 %v2601_v36  ;;  %v1921_v44 = vpack.c.bf16 %v603_v31, %v602_v34  ;;  %v105_v7 = vsel %vm103_vm1, %v104_v35, %v102_v13  ;;  %v158_v45 = vsel %vm157_vm2, %v2539_v61, %v156_v46 }
  0xd4   :  { %2039 = vrcp.f32 %v560_v15  ;;  %v605_v49 = vmul.f32 %v2018_v53, %v2334_v16  ;;  %v211_v38 = vmax.f32 %v105_v7, 1e-12  ;;  %v161_v62 = vsel %vm159_vm3, %v160_v27, %v158_v45 }
  0xd5   :  { %v2022_v12 = vpop.eup %2021  ;;  %2041 = vrcp.f32 %v563_v19  ;;  %vm108_vm4 = vcmp.eq.f32.partialorder %v2562_v5, inf  ;;  %v604_v56 = vmul.f32 %v2020_v40, %v2336_v17  ;;  %v132_v58 = vand.u32 2147483648, %v2621_v22 }
  0xd6   :  { %v2639_v41 = vpop.xlane.xlu1 %93  ;;  %v2024_v42 = vpop.eup %2023  ;;  %2043 = vrsqrt.f32 %v2621_v22  ;;  %v607_v57 = vmul.f32 %v2022_v12, %v2342_v20  ;;  %v219_v59 = vmax.f32 %v161_v62, 1e-12  ;;  %vm110_vm5 = vcmp.eq.f32.partialorder %v2562_v5, 0.0 }
  0xd7   :  { %v2637_v26 = vpop.xlane.xlu0 %77  ;;  %v2026_v43 = vpop.eup %2025  ;;  %2045 = vrcp.f32 %v562_v0  ;;  %v107_v51 = vmul.f32 %v2024_v42, %v2562_v5  ;;  %v111_v17 = vand.u32 2147483648, %v2562_v5  ;;  %vm164_vm6 = vcmp.eq.f32.partialorder %v2560_v1, inf }
  0xd8   :  { %v2028_v10 = vpop.eup %2027  ;;  %2047 = vrsqrt.f32 %v2623_v23  ;;  %v606_v16 = vmul.f32 %v2026_v43, %v2344_v21  ;;  %v1925_v6 = vpack.c.bf16 %v605_v49, %v604_v56  ;;  %v139_v14 = vand.u32 2147483648, %v2637_v26 }
  0xd9   :  { %1920 = vmatpush3.bf16.xpose.msra.mxu0 %v1917_v60  ;;  %1951 = vmatpush3.bf16.xpose.msra.mxu1 %v1917_v60  ;;  %v2030_v50 = vpop.eup %2029  ;;  %2049 = vrsqrt.f32 %v2637_v26  ;;  %v163_v63 = vmul.f32 %v2028_v10, %v2560_v1  ;;  %v109_v3 = vsel %vm108_vm4, %v2562_v5, %v107_v51  ;;  %vm129_vm7 = vcmp.eq.f32.partialorder %v2621_v22, inf }
  0xda   :  { %1922 = vmatprep.subr.bf16.mxu0 %v1921_v44  ;;  %1944 = vmatprep.subr.bf16.mxu1 %v1921_v44  ;;  %v2032_v55 = vpop.eup %2031  ;;  %2051 = vrcp.f32 %v211_v38  ;;  %v2663_v60 = vpop.xlane.xlu1 %95  ;;  %v114_v20 = vmul.f32 %v2030_v50, %v2580_v47  ;;  %v2674_v11 = vpack.c.bf16 %v607_v57, %v606_v16  ;;  %v112_v37 = vsel %vm110_vm5, %v111_v17, %v109_v3 }
  0xdb   :  { %v2653_v54 = vpop.xlane.xlu0 %79  ;;  %v2034_v8 = vpop.eup %2033  ;;  %2053 = vrsqrt.f32 %v2639_v41  ;;  %v609_v52 = vmul.f32 %v2032_v55, %v2350_v24  ;;  %v165_v31 = vsel %vm164_vm6, %v2560_v1, %v163_v63  ;;  %v167_v53 = vand.u32 2147483648, %v2560_v1 }
  0xdc   :  { %v2036_v61 = vpop.eup %2035  ;;  %2055 = vrcp.f32 %v219_v59  ;;  %v170_v18 = vmul.f32 %v2034_v8, %v2582_v48  ;;  %v146_v19 = vand.u32 2147483648, %v2653_v54  ;;  %vm115_vm8 = vcmp.eq.f32.partialorder %v2580_v47, inf }
  0xdd   :  { %v2038_v21 = vpop.eup %2037  ;;  %2057 = vrsqrt.f32 %v2653_v54  ;;  %vm166_vm9 = vcmp.eq.f32.partialorder %v2560_v1, 0.0  ;;  %v116_v34 = vsel %vm115_vm8, %v2580_v47, %v114_v20  ;;  %vm117_vm10 = vcmp.eq.f32.partialorder %v2580_v47, 0.0 }
  0xde   :  { %v2040_v4 = vpop.eup %2039  ;;  %2059 = vrsqrt.f32 %v2663_v60  ;;  %v2692_v24 = vpop.xlane.xlu1 %97  ;;  %v118_v5 = vand.u32 2147483648, %v2580_v47  ;;  %v121_v35 = vmul.f32 %v2036_v61, %v2599_v9  ;;  %v177_v40 = vmul.f32 %v2038_v21, %v2601_v36 }
  0xdf   :  { %v2042_v15 = vpop.eup %2041  ;;  %v2683_v39 = vpop.xlane.xlu0 %81  ;;  %vm171_vm11 = vcmp.eq.f32.partialorder %v2582_v48, inf  ;;  %vm136_vm12 = vcmp.eq.f32.partialorder %v2637_v26, inf  ;;  %v608_v12 = vmul.f32 %v2040_v4, %v2352_v25  ;;  %v212_v27 = vmax.f32 %v112_v37, 1e-12 }
  0xe0   :  { %v2044_v30 = vpop.eup %2043  ;;  %2061 = vrsqrt.f32 %v2683_v39  ;;  %v2706_v13 = vmul.f32 %v2042_v15, %v2358_v28  ;;  %v168_v43 = vsel %vm166_vm9, %v167_v53, %v165_v31  ;;  %vm122_vm13 = vcmp.eq.f32.partialorder %v2599_v9, inf }
  0xe1   :  { %1924 = vmatpush3.bf16.xpose.msra.mxu0 %v1921_v44  ;;  %1952 = vmatpush3.bf16.xpose.msra.mxu1 %v1921_v44  ;;  %v2046_v2 = vpop.eup %2045  ;;  %v128_v46 = vmul.f32 %v2044_v30, %v2621_v22  ;;  %2063 = vrsqrt.f32 %v2692_v24  ;;  %v119_v44 = vsel %vm117_vm10, %v118_v5, %v116_v34  ;;  %vm143_vm14 = vcmp.eq.f32.partialorder %v2653_v54, inf }
  0xe2   :  { %1926 = vmatprep.subr.bf16.mxu0 %v1925_v6  ;;  %1945 = vmatprep.subr.bf16.mxu1 %v1925_v6  ;;  %v2048_v0 = vpop.eup %2047  ;;  %v172_v25 = vsel %vm171_vm11, %v2582_v48, %v170_v18  ;;  %vm173_vm15 = vcmp.eq.f32.partialorder %v2582_v48, 0.0  ;;  %v174_v28 = vand.u32 2147483648, %v2582_v48  ;;  %v125_v45 = vand.u32 2147483648, %v2599_v9 }
  0xe3   :  { %v2050_v42 = vpop.eup %2049  ;;  %v123_v1 = vsel %vm122_vm13, %v2599_v9, %v121_v35  ;;  %vm124_vm0 = vcmp.eq.f32.partialorder %v2599_v9, 0.0  ;;  %vm178_vm1 = vcmp.eq.f32.partialorder %v2601_v36, inf  ;;  %v184_v38 = vmul.f32 %v2048_v0, %v2623_v23 }
  0xe4   :  { %v2052_v7 = vpop.eup %2051  ;;  %v2723_v50 = vpack.c.bf16 %v609_v52, %v608_v12  ;;  %2065 = vrcp.f32 %v212_v27  ;;  %v220_v51 = vmax.f32 %v168_v43, 1e-12  ;;  %v135_v55 = vmul.f32 %v2050_v42, %v2637_v26 }
  0xe5   :  { %v2054_v10 = vpop.eup %2053  ;;  %v259_v49 = vmul.f32 0.5, %v2052_v7  ;;  %vm150_vm2 = vcmp.eq.f32.partialorder %v2683_v39, inf  ;;  %v213_v57 = vmax.f32 %v119_v44, 1e-12  ;;  %v175_v59 = vsel %vm173_vm15, %v174_v28, %v172_v25 }
  0xe6   :  { %v2056_v47 = vpop.eup %2055  ;;  %v126_v61 = vsel %vm124_vm0, %v125_v45, %v123_v1  ;;  %v179_v63 = vsel %vm178_vm1, %v2601_v36, %v177_v40  ;;  %vm180_vm3 = vcmp.eq.f32.partialorder %v2601_v36, 0.0  ;;  %v130_v21 = vsel %vm129_vm7, %v2621_v22, %v128_v46 }
  0xe7   :  { %v2058_v62 = vpop.eup %2057  ;;  %v275_v56 = vmul.f32 %v259_v49, %v2374_v33  ;;  %v267_v16 = vmul.f32 0.5, %v2056_v47  ;;  %v181_v33 = vand.u32 2147483648, %v2601_v36  ;;  %vm131_vm4 = vcmp.eq.f32.partialorder %v2621_v22, 0.0 }
  0xe8   :  { %v2060_v8 = vpop.eup %2059  ;;  %v191_v48 = vmul.f32 %v2054_v10, %v2639_v41  ;;  %v142_v9 = vmul.f32 %v2058_v62, %v2653_v54  ;;  %v610_v20 = vmul.f32 %v2046_v2, %v2360_v29  ;;  %2067 = vrcp.f32 %v220_v51 }
  0xe9   :  { %1928 = vmatpush3.bf16.xpose.msra.mxu0 %v1925_v6  ;;  %1953 = vmatpush3.bf16.xpose.msra.mxu1 %v1925_v6  ;;  %v283_v17 = vmul.f32 %v267_v16, %v2369_v32  ;;  %v198_v4 = vmul.f32 %v2060_v8, %v2663_v60  ;;  %2069 = vrcp.f32 %v213_v57  ;;  %v221_v32 = vmax.f32 %v175_v59, 1e-12 }
  0xea   :  { %1930 = vmatprep.subr.bf16.mxu0 %v2674_v11  ;;  %1946 = vmatprep.subr.bf16.mxu1 %v2674_v11  ;;  %v2062_v3 = vpop.eup %2061  ;;  %vm185_vm5 = vcmp.eq.f32.partialorder %v2623_v23, inf  ;;  %v214_v36 = vmax.f32 %v126_v61, 1e-12  ;;  %v182_v6 = vsel %vm180_vm3, %v181_v33, %v179_v63  ;;  %v133_v15 = vsel %vm131_vm4, %v132_v58, %v130_v21  ;;  %v2221_v61 = vld [vmem:[%s3867_s0 + $0x8] sm:$0xff] }
  0xeb   :  { %1885 = vmatprep.mubr.f32.mxu0 %v275_v56  ;;  %1897 = vmatprep.mubr.f32.mxu1 %v283_v17  ;;  %vm187_vm6 = vcmp.eq.f32.partialorder %v2623_v23, 0.0  ;;  %v2064_v18 = vpop.eup %2063  ;;  %v137_v29 = vsel %vm136_vm12, %v2637_v26, %v135_v55  ;;  %vm138_vm7 = vcmp.eq.f32.partialorder %v2637_v26, 0.0  ;;  %v186_v52 = vsel %vm185_vm5, %v2623_v23, %v184_v38  ;;  %v2222_v33 = vld [vmem:[%s3867_s0 + $0x48] sm:$0xff] }
  0xec   :  { %v188_v30 = vand.u32 2147483648, %v2623_v23  ;;  %v149_v37 = vmul.f32 %v2062_v3, %v2683_v39  ;;  %vm192_vm8 = vcmp.eq.f32.partialorder %v2639_v41, inf  ;;  %vm194_vm9 = vcmp.eq.f32.partialorder %v2639_v41, 0.0  ;;  %v2224_v3 = vld [vmem:[%s3867_s0 + $0x50] sm:$0xff] }
  0xed   :  { %v195_v22 = vand.u32 2147483648, %v2639_v41  ;;  %v222_v58 = vmax.f32 %v182_v6, 1e-12  ;;  %v193_v53 = vsel %vm192_vm8, %v2639_v41, %v191_v48  ;;  %v144_v23 = vsel %vm143_vm14, %v2653_v54, %v142_v9  ;;  %v2223_v9 = vld [vmem:[%s3867_s0 + $0x10] sm:$0xff] }
  0xee   :  { %v189_v31 = vsel %vm187_vm6, %v188_v30, %v186_v52  ;;  %v2066_v34 = vpop.eup %2065  ;;  %2071 = vrcp.f32 %v221_v32  ;;  %v215_v5 = vmax.f32 %v133_v15, 1e-12  ;;  %vm145_vm10 = vcmp.eq.f32.partialorder %v2653_v54, 0.0  ;;  %v2226_v52 = vld [vmem:[%s3867_s0 + $0x60] sm:$0xff] }
  0xef   :  { %v153_v2 = vand.u32 2147483648, %v2683_v39  ;;  %v205_v35 = vmul.f32 %v2064_v18, %v2692_v24  ;;  %2073 = vrcp.f32 %v214_v36  ;;  %v196_v40 = vsel %vm194_vm9, %v195_v22, %v193_v53  ;;  %v2225_v18 = vld [vmem:[%s3867_s0 + $0x20] sm:$0xff]  ;;  %v2228_v53 = vld [vmem:[%s3867_s0 + $0x58] sm:$0xff] }
  0xf0   :  { %v223_v0 = vmax.f32 %v189_v31, 1e-12  ;;  %v147_v46 = vsel %vm145_vm10, %v146_v19, %v144_v23  ;;  %v151_v12 = vsel %vm150_vm2, %v2683_v39, %v149_v37  ;;  %vm152_vm11 = vcmp.eq.f32.partialorder %v2683_v39, 0.0 }
  0xf1   :  { %1932 = vmatpush3.bf16.xpose.msra.mxu0 %v2674_v11  ;;  %1954 = vmatpush3.bf16.xpose.msra.mxu1 %v2674_v11  ;;  %v140_v11 = vsel %vm138_vm7, %v139_v14, %v137_v29  ;;  %v1937_v26 = vpack.c.bf16 %v2706_v13, %v610_v20  ;;  %2075 = vrcp.f32 %v222_v58  ;;  %vm199_vm12 = vcmp.eq.f32.partialorder %v2663_v60, inf  ;;  %v2227_v58 = vld [vmem:[%s3867_s0 + $0x18] sm:$0xff] }
  0xf2   :  { %1934 = vmatprep.subr.bf16.mxu0 %v2723_v50  ;;  %1947 = vmatprep.subr.bf16.mxu1 %v2723_v50  ;;  %v216_v14 = vmax.f32 %v140_v11, 1e-12  ;;  %v2068_v27 = vpop.eup %2067  ;;  %2077 = vrcp.f32 %v215_v5  ;;  %v224_v41 = vmax.f32 %v196_v40, 1e-12  ;;  %v200_v42 = vsel %vm199_vm12, %v2663_v60, %v198_v4  ;;  %v2229_v5 = vld [vmem:[%s3867_s0 + $0x28] sm:$0xff] }
  0xf3   :  { %vm201_vm13 = vcmp.eq.f32.partialorder %v2663_v60, 0.0  ;;  %v2070_v54 = vpop.eup %2069  ;;  %v217_v19 = vmax.f32 %v147_v46, 1e-12  ;;  %v154_v43 = vsel %vm152_vm11, %v153_v2, %v151_v12  ;;  %v202_v44 = vand.u32 2147483648, %v2663_v60  ;;  %v2230_v2 = vld [vmem:[%s3867_s0 + $0x68] sm:$0xff]  ;;  %v2231_v46 = vld [vmem:[%s3867_s0 + $0x30] sm:$0xff] }
  0xf4   :  { %vm206_vm14 = vcmp.eq.f32.partialorder %v2692_v24, inf  ;;  %2079 = vrcp.f32 %v223_v0  ;;  %vm208_vm15 = vcmp.eq.f32.partialorder %v2692_v24, 0.0  ;;  %v209_v13 = vand.u32 2147483648, %v2692_v24 }
  0xf5   :  { %v207_v39 = vsel %vm206_vm14, %v2692_v24, %v205_v35  ;;  %2081 = vrcp.f32 %v216_v14  ;;  %v203_v7 = vsel %vm201_vm13, %v202_v44, %v200_v42  ;;  %v218_v25 = vmax.f32 %v154_v43, 1e-12  ;;  %v2233_v42 = vld [vmem:[%s3867_s0 + $0x38] sm:$0xff]  ;;  %v2848_v44 = vld [vmem:[%s3870_s3] ss:$0 sm:$0xff] }
  0xf6   :  { %2083 = vrcp.f32 %v224_v41  ;;  %v225_v60 = vmax.f32 %v203_v7, 1e-12  ;;  %v210_v28 = vsel %vm208_vm15, %v209_v13, %v207_v39  ;;  %v260_v38 = vmul.f32 0.5, %v2066_v34  ;;  %v865_v13 = vpop.permute.xlu0 %864 }
  0xf7   :  { %2085 = vrcp.f32 %v217_v19  ;;  %v226_v45 = vmax.f32 %v210_v28, 1e-12  ;;  %v261_v62 = vmul.f32 0.5, %v2070_v54  ;;  %v774_v34 = vlaneseq  ;;  %v2234_v19 = vld [vmem:[%s3867_s0 + $0x78] sm:$0xff] }
  0xf8   :  { %v2072_v10 = vpop.eup %2071  ;;  %2087 = vrcp.f32 %v225_v60  ;;  %v276_v63 = vmul.f32 %v2221_v61, %v260_v38  ;;  %v3908_v39 = vmov 0  ;;  %vm915_vm3 = vcmp.eq.s32.totalorder %v865_v13, %v2848_v44  ;;  %v2863_v60 = vpop.permute.xlu1 %867 }
  0xf9   :  { %1936 = vmatpush3.bf16.xpose.msra.mxu0 %v2723_v50  ;;  %1955 = vmatpush3.bf16.xpose.msra.mxu1 %v2723_v50  ;;  %v2074_v49 = vpop.eup %2073  ;;  %2089 = vrcp.f32 %v218_v25  ;;  %v268_v50 = vmul.f32 0.5, %v2068_v27  ;;  %v269_v55 = vmul.f32 0.5, %v2072_v10  ;;  %v277_v20 = vmul.f32 %v2223_v9, %v261_v62 }
  0xfa   :  { %1938 = vmatprep.subr.bf16.mxu0 %v1937_v26  ;;  %1948 = vmatprep.subr.bf16.mxu1 %v1937_v26  ;;  %2091 = vrcp.f32 %v226_v45  ;;  %v262_v21 = vmul.f32 0.5, %v2074_v49  ;;  %v2832_v27 = vand.u32 127, %v774_v34  ;;  %v2834_v41 = vshrl.u32 %v774_v34, 7 }
  0xfb   :  { %v2076_v1 = vpop.eup %2075  ;;  %v284_v17 = vmul.f32 %v2222_v33, %v268_v50  ;;  %v285_v4 = vmul.f32 %v2224_v3, %v269_v55  ;;  %v3877_v7 = vmov 0.0   ;;  %vm3872_vm5 = vcmask 7168  }
  0xfc   :  { %v2078_v24 = vpop.eup %2077  ;;  %v270_v48 = vmul.f32 0.5, %v2076_v1  ;;  %v278_v31 = vmul.f32 %v2227_v58, %v262_v21  ;;  %vm778_vm0 = vcmp.lt.s32.totalorder %v2832_v27, 8  ;;  %vm814_vm1 = vcmp.ne.s32.totalorder %v2834_v41, %v2832_v27  ;;  %v2865_v28 = vpop.permute.xlu1 %870  ;;  %356 = vst.msk [vmem:[#allocation6] sm:$0xff] %vm3872_vm5, %v3877_v7  ;;  %324 = vst.msk [vmem:[#allocation4] sm:$0xff] %vm3872_vm5, %v3877_v7 }
  0xfd   :  { %v263_v57 = vmul.f32 0.5, %v2078_v24  ;;  %vm2852_vm2 = vmand %vm778_vm0, %vm814_vm1  ;;  %325 = vst.msk [vmem:[#allocation4 + $0x8] sm:$0xff] %vm3872_vm5, %v3877_v7  ;;  %v2264_v38 = vmov -inf   ;;  %vm916_vm7 = vcmp.eq.s32.totalorder %v2863_v60, %v2848_v44  ;;  %v785_v61 = vadd.s32 32, %v2834_v41 }
  0xfe   :  { %v2080_v47 = vpop.eup %2079  ;;  %v286_v23 = vmul.f32 %v2228_v53, %v270_v48  ;;  %v3909_v39 = vsel %vm2852_vm2, 4294967295, %v3908_v39  ;;  %vm931_vm4 = vmand %vm2852_vm2, %vm915_vm3  ;;  %326 = vst.msk [vmem:[#allocation4 + $0x10] sm:$0xff] %vm3872_vm5, %v3877_v7  ;;  %v3912_v33 = vmov 0  ;;  %v3918_v3 = vmov 0 }
  0xff   :  { %v2082_v51 = vpop.eup %2081  ;;  %v271_v8 = vmul.f32 0.5, %v2080_v47  ;;  %v279_v29 = vmul.f32 %v2225_v18, %v263_v57  ;;  %v2860_v25 = vsel %vm931_vm4, 1.0, %v3877_v7  ;;  %327 = vst.msk [vmem:[#allocation4 + $0x18] sm:$0xff] %vm3872_vm5, %v3877_v7  ;;  %328 = vst.msk [vmem:[#allocation4 + $0x20] sm:$0xff] %vm3872_vm5, %v3877_v7  ;;  %v790_v57 = vadd.s32 72, %v2834_v41 }
 0x100   :  { %v2084_v56 = vpop.eup %2083  ;;  %v264_v36 = vmul.f32 0.5, %v2082_v51  ;;  %1092 = vadd.xlane.f32.xlu1 %v2860_v25  ;;  %v2867_v45 = vpop.permute.xlu1 %873  ;;  %329 = vst.msk [vmem:[#allocation4 + $0x28] sm:$0xff] %vm3872_vm5, %v3877_v7  ;;  %330 = vst.msk [vmem:[#allocation4 + $0x30] sm:$0xff] %vm3872_vm5, %v3877_v7  ;;  %vm818_vm1 = vcmp.ne.s32.totalorder %v785_v61, %v2832_v27  ;;  %v791_v58 = vadd.s32 80, %v2834_v41  ;;  %v788_v48 = vadd.s32 56, %v2834_v41 }
 0x101   :  { %1940 = vmatpush3.bf16.xpose.msra.mxu0 %v1937_v26  ;;  %1956 = vmatpush3.bf16.xpose.msra.mxu1 %v1937_v26  ;;  %v2086_v16 = vpop.eup %2085  ;;  %v272_v6 = vmul.f32 0.5, %v2084_v56  ;;  %v287_v30 = vmul.f32 %v2226_v52, %v271_v8  ;;  %v2232_v26 = vld [vmem:[%s3867_s0 + $0x70] sm:$0xff]  ;;  %331 = vst.msk [vmem:[#allocation4 + $0x38] sm:$0xff] %vm3872_vm5, %v3877_v7  ;;  %332 = vst.msk [vmem:[#allocation4 + $0x40] sm:$0xff] %vm3872_vm5, %v3877_v7  ;;  %v782_v56 = vadd.s32 8, %v2834_v41  ;;  %v3910_v8 = vmov 0 }
 0x102   :  { %v2088_v59 = vpop.eup %2087  ;;  %v265_v37 = vmul.f32 0.5, %v2086_v16  ;;  %v280_v11 = vmul.f32 %v2229_v5, %v264_v36  ;;  %333 = vst.msk [vmem:[#allocation4 + $0x48] sm:$0xff] %vm3872_vm5, %v3877_v7  ;;  %334 = vst.msk [vmem:[#allocation4 + $0x50] sm:$0xff] %vm3872_vm5, %v3877_v7  ;;  %v784_v16 = vadd.s32 24, %v2834_v41  ;;  %vm823_vm10 = vcmp.ne.s32.totalorder %v790_v57, %v2832_v27 }
 0x103   :  { %v2090_v32 = vpop.eup %2089  ;;  %v273_v22 = vmul.f32 0.5, %v2088_v59  ;;  %v288_v35 = vmul.f32 %v2230_v2, %v272_v6  ;;  %335 = vst.msk [vmem:[#allocation4 + $0x58] sm:$0xff] %vm3872_vm5, %v3877_v7  ;;  %336 = vst.msk [vmem:[#allocation4 + $0x60] sm:$0xff] %vm3872_vm5, %v3877_v7  ;;  %v1076_v51 = vld [vmem:[#allocation6] sm:$0xff]  ;;  %vm815_vm6 = vcmp.ne.s32.totalorder %v782_v56, %v2832_v27  ;;  %v786_v59 = vadd.s32 40, %v2834_v41 }
 0x104   :  { %v2092_v15 = vpop.eup %2091  ;;  %v266_v40 = vmul.f32 0.5, %v2090_v32  ;;  %v281_v12 = vmul.f32 %v2231_v46, %v265_v37  ;;  %v2869_v10 = vpop.permute.xlu1 %876  ;;  %337 = vst.msk [vmem:[#allocation4 + $0x68] sm:$0xff] %vm3872_vm5, %v3877_v7  ;;  %338 = vst.msk [vmem:[#allocation4 + $0x70] sm:$0xff] %vm3872_vm5, %v3877_v7  ;;  %vm817_vm9 = vcmp.ne.s32.totalorder %v784_v16, %v2832_v27  ;;  %vm918_vm12 = vcmp.eq.s32.totalorder %v2867_v45, %v2848_v44 }
 0x105   :  { %v274_v0 = vmul.f32 0.5, %v2092_v15  ;;  %v289_v14 = vmul.f32 %v2232_v26, %v273_v22  ;;  %339 = vst.msk [vmem:[#allocation4 + $0x78] sm:$0xff] %vm3872_vm5, %v3877_v7  ;;  %340 = vst.msk [vmem:[#allocation5] sm:$0xff] %vm3872_vm5, %v3877_v7  ;;  %vm819_vm14 = vcmp.ne.s32.totalorder %v786_v59, %v2832_v27  ;;  %v3920_v15 = vmov 0 }
 0x106   :  { %v282_v54 = vmul.f32 %v2233_v42, %v266_v40  ;;  %341 = vst.msk [vmem:[#allocation5 + $0x8] sm:$0xff] %vm3872_vm5, %v3877_v7  ;;  %342 = vst.msk [vmem:[#allocation5 + $0x10] sm:$0xff] %vm3872_vm5, %v3877_v7  ;;  %v787_v16 = vadd.s32 48, %v2834_v41  ;;  %v795_v59 = vadd.s32 112, %v2834_v41 }
 0x107   :  { %v290_v43 = vmul.f32 %v2234_v19, %v274_v0  ;;  %343 = vst.msk [vmem:[#allocation5 + $0x18] sm:$0xff] %vm3872_vm5, %v3877_v7  ;;  %344 = vst.msk [vmem:[#allocation5 + $0x20] sm:$0xff] %vm3872_vm5, %v3877_v7 }
 0x108   :  { %1886 = vmatmul.mubr.f32.vlgmr.msra.gmra.mrb[0].mxu0 %v276_v63  ;;  %1898 = vmatmul.mubr.f32.vlgmr.msra.gmra.mrb[0].mxu1 %v284_v17  ;;  %v2871_v49 = vpop.permute.xlu1 %879  ;;  %345 = vst.msk [vmem:[#allocation5 + $0x28] sm:$0xff] %vm3872_vm5, %v3877_v7  ;;  %346 = vst.msk [vmem:[#allocation5 + $0x30] sm:$0xff] %vm3872_vm5, %v3877_v7  ;;  %v789_v63 = vadd.s32 64, %v2834_v41 }
 0x109   :  { %1888 = vmatprep.mubr.f32.mxu0 %v277_v20  ;;  %1900 = vmatprep.mubr.f32.mxu1 %v285_v4  ;;  %347 = vst.msk [vmem:[#allocation5 + $0x38] sm:$0xff] %vm3872_vm5, %v3877_v7  ;;  %348 = vst.msk [vmem:[#allocation5 + $0x40] sm:$0xff] %vm3872_vm5, %v3877_v7 }
 0x10a   :  { %349 = vst.msk [vmem:[#allocation5 + $0x48] sm:$0xff] %vm3872_vm5, %v3877_v7  ;;  %350 = vst.msk [vmem:[#allocation5 + $0x50] sm:$0xff] %vm3872_vm5, %v3877_v7  ;;  %vm822_vm3 = vcmp.ne.s32.totalorder %v789_v63, %v2832_v27 }
 0x10b   :  { %351 = vst.msk [vmem:[#allocation5 + $0x58] sm:$0xff] %vm3872_vm5, %v3877_v7  ;;  %352 = vst.msk [vmem:[#allocation5 + $0x60] sm:$0xff] %vm3872_vm5, %v3877_v7 }
 0x10c   :  { %1889 = vmatmul.mubr.f32.gmra.mrb[2].mxu0 %v278_v31  ;;  %1901 = vmatmul.mubr.f32.gmra.mrb[2].mxu1 %v286_v23  ;;  %v2873_v1 = vpop.permute.xlu1 %882  ;;  %353 = vst.msk [vmem:[#allocation5 + $0x68] sm:$0xff] %vm3872_vm5, %v3877_v7  ;;  %354 = vst.msk [vmem:[#allocation5 + $0x70] sm:$0xff] %vm3872_vm5, %v3877_v7 }
 0x10d   :  { %1891 = vmatprep.mubr.f32.mxu0 %v279_v29  ;;  %1903 = vmatprep.mubr.f32.mxu1 %v287_v30  ;;  %355 = vst.msk [vmem:[#allocation5 + $0x78] sm:$0xff] %vm3872_vm5, %v3877_v7  ;;  %357 = vst.msk [vmem:[#allocation6 + $0x8] sm:$0xff] %vm3872_vm5, %v3877_v7  ;;  %v792_v30 = vadd.s32 88, %v2834_v41 }
 0x10e   :  { %358 = vst.msk [vmem:[#allocation6 + $0x10] sm:$0xff] %vm3872_vm5, %v3877_v7  ;;  %359 = vst.msk [vmem:[#allocation6 + $0x18] sm:$0xff] %vm3872_vm5, %v3877_v7 }
 0x10f   :  { %360 = vst.msk [vmem:[#allocation6 + $0x20] sm:$0xff] %vm3872_vm5, %v3877_v7  ;;  %361 = vst.msk [vmem:[#allocation6 + $0x28] sm:$0xff] %vm3872_vm5, %v3877_v7 }
 0x110   :  { %1892 = vmatmul.mubr.f32.gmra.mrb[4].mxu0 %v280_v11  ;;  %1904 = vmatmul.mubr.f32.gmra.mrb[4].mxu1 %v288_v35  ;;  %v2875_v24 = vpop.permute.xlu1 %885  ;;  %362 = vst.msk [vmem:[#allocation6 + $0x30] sm:$0xff] %vm3872_vm5, %v3877_v7  ;;  %363 = vst.msk [vmem:[#allocation6 + $0x38] sm:$0xff] %vm3872_vm5, %v3877_v7 }
 0x111   :  { %1894 = vmatprep.mubr.f32.mxu0 %v281_v12  ;;  %1906 = vmatprep.mubr.f32.mxu1 %v289_v14  ;;  %364 = vst.msk [vmem:[#allocation6 + $0x40] sm:$0xff] %vm3872_vm5, %v3877_v7  ;;  %365 = vst.msk [vmem:[#allocation6 + $0x48] sm:$0xff] %vm3872_vm5, %v3877_v7  ;;  %v783_v14 = vadd.s32 16, %v2834_v41 }
 0x112   :  { %366 = vst.msk [vmem:[#allocation6 + $0x50] sm:$0xff] %vm3872_vm5, %v3877_v7  ;;  %367 = vst.msk [vmem:[#allocation6 + $0x58] sm:$0xff] %vm3872_vm5, %v3877_v7 }
 0x113   :  { %368 = vst.msk [vmem:[#allocation6 + $0x60] sm:$0xff] %vm3872_vm5, %v3877_v7  ;;  %369 = vst.msk [vmem:[#allocation6 + $0x68] sm:$0xff] %vm3872_vm5, %v3877_v7 }
 0x114   :  { %1895 = vmatmul.mubr.f32.gmra.mrb[6].mxu0 %v282_v54  ;;  %1907 = vmatmul.mubr.f32.gmra.mrb[6].mxu1 %v290_v43  ;;  %v2877_v47 = vpop.permute.xlu1 %888  ;;  %370 = vst.msk [vmem:[#allocation6 + $0x70] sm:$0xff] %vm3872_vm5, %v3877_v7  ;;  %371 = vst.msk [vmem:[#allocation6 + $0x78] sm:$0xff] %vm3872_vm5, %v3877_v7  ;;  %v793_v43 = vadd.s32 96, %v2834_v41 }
 0x115   :  { %309 = vst.msk [vmem:[#allocation3 + $0x8] sm:$0xff] %vm3872_vm5, %v2264_v38  ;;  %308 = vst.msk [vmem:[#allocation3] sm:$0xff] %vm3872_vm5, %v2264_v38 }
 0x116   :  { %310 = vst.msk [vmem:[#allocation3 + $0x10] sm:$0xff] %vm3872_vm5, %v2264_v38  ;;  %311 = vst.msk [vmem:[#allocation3 + $0x18] sm:$0xff] %vm3872_vm5, %v2264_v38 }
 0x117   :  { %312 = vst.msk [vmem:[#allocation3 + $0x20] sm:$0xff] %vm3872_vm5, %v2264_v38  ;;  %313 = vst.msk [vmem:[#allocation3 + $0x28] sm:$0xff] %vm3872_vm5, %v2264_v38 }
 0x118   :  { %314 = vst.msk [vmem:[#allocation3 + $0x30] sm:$0xff] %vm3872_vm5, %v2264_v38  ;;  %315 = vst.msk [vmem:[#allocation3 + $0x38] sm:$0xff] %vm3872_vm5, %v2264_v38  ;;  %v2991_v50 = vpop.permute.xlu1 %894 }
 0x119   :  { %316 = vst.msk [vmem:[#allocation3 + $0x40] sm:$0xff] %vm3872_vm5, %v2264_v38  ;;  %317 = vst.msk [vmem:[#allocation3 + $0x48] sm:$0xff] %vm3872_vm5, %v2264_v38 }
 0x11a   :  { %318 = vst.msk [vmem:[#allocation3 + $0x50] sm:$0xff] %vm3872_vm5, %v2264_v38  ;;  %319 = vst.msk [vmem:[#allocation3 + $0x58] sm:$0xff] %vm3872_vm5, %v2264_v38 }
 0x11b   :  { %320 = vst.msk [vmem:[#allocation3 + $0x60] sm:$0xff] %vm3872_vm5, %v2264_v38  ;;  %321 = vst.msk [vmem:[#allocation3 + $0x68] sm:$0xff] %vm3872_vm5, %v2264_v38 }
 0x11c   :  { %322 = vst.msk [vmem:[#allocation3 + $0x70] sm:$0xff] %vm3872_vm5, %v2264_v38  ;;  %323 = vst.msk [vmem:[#allocation3 + $0x78] sm:$0xff] %vm3872_vm5, %v2264_v38 }
 0x11d   :  { %vm3002_vm8 = vmand %vm778_vm0, %vm815_vm6  ;;  %vm920_vm6 = vcmp.eq.s32.totalorder %v2871_v49, %v2848_v44 }
 0x11e   :  { %v3911_v8 = vsel %vm3002_vm8, 4294967295, %v3910_v8  ;;  %vm932_vm11 = vmand %vm3002_vm8, %vm916_vm7 }
 0x11f   :  { %vm3017_vm13 = vmand %vm778_vm0, %vm817_vm9  ;;  %v3030_v21 = vsel %vm932_vm11, 1.0, %v3877_v7  ;;  %vm919_vm9 = vcmp.eq.s32.totalorder %v2869_v10, %v2848_v44 }
 0x120   :  { %v3913_v33 = vsel %vm3017_vm13, 4294967295, %v3912_v33  ;;  %vm3024_vm15 = vmand %vm778_vm0, %vm823_vm10 }
 0x121   :  { %vm3035_vm4 = vmand %vm3017_vm13, %vm918_vm12 }
 0x122   :  { %vm3047_vm7 = vmand %vm778_vm0, %vm819_vm14  ;;  %v3084_v52 = vsel %vm3035_vm4, 1.0, %v3877_v7 }
 0x123   :  { %v3919_v3 = vsel %vm3047_vm7, 4294967295, %v3918_v3  ;;  %vm3065_vm10 = vmand %vm778_vm0, %vm818_vm1  ;;  %vm825_vm1 = vcmp.ne.s32.totalorder %v792_v30, %v2832_v27 }
 0x124   :  { %v3921_v15 = vsel %vm3065_vm10, 4294967295, %v3920_v15  ;;  %vm3077_vm11 = vmand %vm778_vm0, %vm822_vm3  ;;  %vm824_vm3 = vcmp.ne.s32.totalorder %v791_v58, %v2832_v27 }
 0x125   :  { %vm936_vm12 = vmand %vm3047_vm7, %vm920_vm6 }
 0x126   :  { %vm935_vm14 = vmand %vm3065_vm10, %vm919_vm9  ;;  %v3117_v11 = vsel %vm936_vm12, 1.0, %v3877_v7  ;;  %vm816_vm9 = vcmp.ne.s32.totalorder %v783_v14, %v2832_v27  ;;  %vm826_vm12 = vcmp.ne.s32.totalorder %v793_v43, %v2832_v27 }
 0x127   :  { %v3121_v2 = vsel %vm935_vm14, 1.0, %v3877_v7  ;;  %vm3144_vm4 = vmand %vm778_vm0, %vm825_vm1  ;;  %v3311_v7 = vld [vmem:[#allocation3 + $0x58] sm:$0xff] }
 0x128   :  { %vm3155_vm6 = vmand %vm778_vm0, %vm824_vm3  ;;  %3953 = vst [vmem:[#allocation18_spill] sm:$0xff] %v3311_v7 }
 0x129   :  { %vm3178_vm14 = vmand %vm778_vm0, %vm816_vm9  ;;  %vm820_vm9 = vcmp.ne.s32.totalorder %v787_v16, %v2832_v27  ;;  %v3275_v16 = vld [vmem:[#allocation3 + $0x48] sm:$0xff] }
 0x12a   :  { %vm3191_vm1 = vmand %vm778_vm0, %vm826_vm12  ;;  %3942 = vst [vmem:[#allocation10_spill] sm:$0xff] %v3275_v16 }
 0x18d   :  { %v1093_v62 = vpop.xlane.xlu1 %1092 }
 0x18e   :  { %v1124_v55 = vadd.f32 %v1093_v62, %v1076_v51  ;;  %v794_v51 = vadd.s32 104, %v2834_v41 }
 0x190   :  { %1140 = vst.msk [vmem:[#allocation6] sm:$0xff] %vm3872_vm5, %v1124_v55  ;;  %vm827_vm3 = vcmp.ne.s32.totalorder %v794_v51, %v2832_v27  ;;  %vm828_vm5 = vcmp.ne.s32.totalorder %v795_v59, %v2832_v27  ;;  %v855_v51 = vld [vmem:[%s3869_s2 + $0x48] sm:$0xff] }
 0x191   :  { %vm3207_vm12 = vmand %vm778_vm0, %vm827_vm3  ;;  %vm821_vm3 = vcmp.ne.s32.totalorder %v788_v48, %v2832_v27 }
 0x1db   :  { %v3041_v9 = vpop.f32.mrb[0].mxu0  ;;  %v3043_v20 = vpop.f32.mrb[0].mxu1 }
 0x1dc   :  { %v3053_v4 = vpop.f32.mrb[1].mxu0  ;;  %v3055_v32 = vpop.f32.mrb[1].mxu1  ;;  %v1165_v36 = vsel %vm3024_vm15, %v3043_v20, -inf  ;;  %v1157_v6 = vsel %vm3002_vm8, %v3041_v9, -inf  ;;  %v3071_v18 = vmul.f32 %v3041_v9, %v3030_v21 }
 0x1dd   :  { %1206 = vmax.xlane.f32.xlu0 %v1165_v36  ;;  %1190 = vmax.xlane.f32.xlu1 %v1157_v6  ;;  %v1156_v23 = vsel %vm2852_vm2, %v3053_v4, -inf  ;;  %v1164_v34 = vsel %vm3077_vm11, %v3055_v32, -inf  ;;  %v995_v40 = vmul.f32 %v2860_v25, %v3053_v4  ;;  %v796_v6 = vadd.s32 120, %v2834_v41  ;;  %v1081_v41 = vld [vmem:[#allocation6 + $0x28] sm:$0xff] }
 0x1df   :  { %v3092_v37 = vpop.f32.mrb[2].mxu0  ;;  %v3094_v22 = vpop.f32.mrb[2].mxu1 }
 0x1e0   :  { %v3102_v31 = vpop.f32.mrb[3].mxu0  ;;  %v3104_v53 = vpop.f32.mrb[3].mxu1  ;;  %v3114_v5 = vmul.f32 %v3092_v37, %v3084_v52  ;;  %v1159_v46 = vsel %vm3017_vm13, %v3092_v37, -inf  ;;  %v1167_v45 = vsel %vm3144_vm4, %v3094_v22, -inf  ;;  %vm3235_vm13 = vmand %vm778_vm0, %vm821_vm3 }
 0x1e1   :  { %1188 = vmax.xlane.f32.xlu0 %v1156_v23  ;;  %1204 = vmax.xlane.f32.xlu1 %v1164_v34  ;;  %v1166_v10 = vsel %vm3155_vm6, %v3104_v53, -inf  ;;  %v1158_v55 = vsel %vm3178_vm14, %v3102_v31, -inf }
 0x1e3   :  { %v3123_v35 = vpop.f32.mrb[4].mxu0  ;;  %v3127_v0 = vpop.f32.mrb[4].mxu1 }
 0x1e4   :  { %v3133_v12 = vpop.f32.mrb[5].mxu0  ;;  %v3135_v26 = vpop.f32.mrb[5].mxu1  ;;  %v3140_v42 = vmul.f32 %v3123_v35, %v3117_v11  ;;  %v1161_v61 = vsel %vm3047_vm7, %v3123_v35, -inf  ;;  %v1169_v58 = vsel %vm3207_vm12, %v3127_v0, -inf  ;;  %vm3228_vm7 = vmand %vm778_vm0, %vm828_vm5 }
 0x1e5   :  { %1194 = vmax.xlane.f32.xlu0 %v1159_v46  ;;  %1011 = vadd.xlane.f32.xlu1 %v995_v40  ;;  %v3150_v19 = vmul.f32 %v3121_v2, %v3133_v12  ;;  %v1160_v56 = vsel %vm3065_vm10, %v3133_v12, -inf  ;;  %v1168_v63 = vsel %vm3191_vm1, %v3135_v26, -inf  ;;  %vm3215_vm10 = vmand %vm778_vm0, %vm820_vm9  ;;  %vm829_vm9 = vcmp.ne.s32.totalorder %v796_v6, %v2832_v27  ;;  %v859_v27 = vld [vmem:[%s3869_s2 + $0x68] sm:$0xff]  ;;  %v3279_v6 = vld [vmem:[#allocation3 + $0x40] sm:$0xff] }
 0x1e6   :  { %vm3247_vm5 = vmand %vm778_vm0, %vm829_vm9  ;;  %3943 = vst [vmem:[#allocation11_spill] sm:$0xff] %v3279_v6  ;;  %vm3945_vm0 = vcmask 7168  }
 0x1e7   :  { %v3159_v25 = vpop.f32.mrb[6].mxu0  ;;  %v3161_v60 = vpop.f32.mrb[6].mxu1  ;;  %vm3946_vm3 = vmmov %vm3945_vm0 }
 0x1e8   :  { %v3170_v49 = vpop.f32.mrb[7].mxu0  ;;  %v3172_v38 = vpop.f32.mrb[7].mxu1  ;;  %v1163_v40 = vsel %vm3235_vm13, %v3159_v25, -inf  ;;  %v1171_v43 = vsel %vm3247_vm5, %v3161_v60, -inf }
 0x1e9   :  { %1210 = vmax.xlane.f32.xlu0 %v1167_v45  ;;  %1208 = vmax.xlane.f32.xlu1 %v1166_v10  ;;  %v1162_v23 = vsel %vm3215_vm10, %v3170_v49, -inf  ;;  %v1170_v46 = vsel %vm3228_vm7, %v3172_v38, -inf  ;;  %v857_v45 = vld [vmem:[%s3869_s2 + $0x58] sm:$0xff]  ;;  %v860_v10 = vld [vmem:[%s3869_s2 + $0x70] sm:$0xff] }
 0x1ed   :  { %1192 = vmax.xlane.f32.xlu0 %v1158_v55  ;;  %1196 = vmax.xlane.f32.xlu1 %v1160_v56  ;;  %v861_v55 = vld [vmem:[%s3869_s2 + $0x78] sm:$0xff]  ;;  %v3273_v56 = vld [vmem:[#allocation3 + $0x8] sm:$0xff] }
 0x1f1   :  { %1198 = vmax.xlane.f32.xlu0 %v1161_v61  ;;  %1212 = vmax.xlane.f32.xlu1 %v1168_v63 }
 0x1f5   :  { %1214 = vmax.xlane.f32.xlu0 %v1169_v58  ;;  %1200 = vmax.xlane.f32.xlu1 %v1162_v23  ;;  %v3281_v58 = vld [vmem:[#allocation3] sm:$0xff] }
 0x1f6   :  { %3944 = vst [vmem:[#allocation12_spill] sm:$0xff] %v3281_v58 }
 0x1f9   :  { %1202 = vmax.xlane.f32.xlu0 %v1163_v40  ;;  %1216 = vmax.xlane.f32.xlu1 %v1170_v46 }
 0x1fd   :  { %1218 = vmax.xlane.f32.xlu0 %v1171_v43 }
 0x201   :  { %1094 = vadd.xlane.f32.xlu0 %v3030_v21  ;;  %v858_v21 = vld [vmem:[%s3869_s2 + $0x60] sm:$0xff] }
 0x20a   :  { %897 = vperm.xlu1 %1964, %v857_v45  }
 0x20e   :  { %903 = vperm.xlu1 %1964, %v859_v27  }
 0x212   :  { %906 = vperm.xlu1 %1964, %v860_v10   ;;  %v3309_v10 = vld [vmem:[#allocation3 + $0x50] sm:$0xff] }
 0x213   :  { %3952 = vst [vmem:[#allocation17_spill] sm:$0xff] %v3309_v10 }
 0x217   :  { %891 = vperm.xlu0 %1963, %v855_v51  }
 0x21b   :  { %900 = vperm.xlu0 %1963, %v858_v21   ;;  %v979_v21 = vld [vmem:[#allocation5] sm:$0xff] }
 0x21f   :  { %909 = vperm.xlu0 %1963, %v861_v55   ;;  %v3296_v55 = vld [vmem:[#allocation3 + $0x18] sm:$0xff] }
 0x220   :  { %3948 = vst [vmem:[#allocation14_spill] sm:$0xff] %v3296_v55 }
 0x26a   :  { %v1191_v59 = vpop.xlane.xlu1 %1190  ;;  %v1207_v61 = vpop.xlane.xlu0 %1206 }
 0x26b   :  { %v1221_v63 = vmax.f32 %v3273_v56, %v1191_v59  ;;  %v1229_v48 = vmax.f32 %v3275_v16, %v1207_v61 }
 0x26d   :  { %1557 = vst.msk [vmem:[#allocation3 + $0x8] sm:$0xff] %vm3945_vm0, %v1221_v63  ;;  %vm1237_vm9 = vcmp.eq.f32.partialorder %v1221_v63, -inf  ;;  %vm1245_vm2 = vcmp.eq.f32.partialorder %v1229_v48, -inf }
 0x26e   :  { %1565 = vst.msk [vmem:[#allocation3 + $0x48] sm:$0xff] %vm3946_vm3, %v1229_v48  ;;  %v1205_v23 = vpop.xlane.xlu1 %1204  ;;  %v1189_v40 = vpop.xlane.xlu0 %1188  ;;  %v3285_v46 = vsel %vm1237_vm9, 0.0, %v1221_v63  ;;  %v3287_v43 = vsel %vm1245_vm2, 0.0, %v1229_v48  ;;  %vm3949_vm3 = vmmov %vm3945_vm0 }
 0x26f   :  { %3947 = vst [vmem:[#allocation13_spill] sm:$0xff] %v3287_v43  ;;  %v1228_v45 = vmax.f32 %v3279_v6, %v1205_v23  ;;  %v1220_v27 = vmax.f32 %v3281_v58, %v1189_v40  ;;  %1323 = vperm.xlu0 %1963, %v3285_v46   ;;  %v3342_v6 = vld [vmem:[#allocation3 + $0x28] sm:$0xff] }
 0x270   :  { %3962 = vst [vmem:[#allocation25_spill] sm:$0xff] %v3342_v6 }
 0x271   :  { %1564 = vst.msk [vmem:[#allocation3 + $0x40] sm:$0xff] %vm3945_vm0, %v1228_v45  ;;  %vm1236_vm2 = vcmp.eq.f32.partialorder %v1220_v27, -inf  ;;  %vm1244_vm9 = vcmp.eq.f32.partialorder %v1228_v45, -inf }
 0x272   :  { %1556 = vst.msk [vmem:[#allocation3] sm:$0xff] %vm3949_vm3, %v1220_v27  ;;  %v1012_v59 = vpop.xlane.xlu1 %1011  ;;  %v1195_v61 = vpop.xlane.xlu0 %1194  ;;  %v3300_v63 = vsel %vm1236_vm2, 0.0, %v1220_v27  ;;  %v3302_v48 = vsel %vm1244_vm9, 0.0, %v1228_v45  ;;  %vm3954_vm3 = vmmov %vm3945_vm0 }
 0x273   :  { %3950 = vst [vmem:[#allocation15_spill] sm:$0xff] %v3300_v63  ;;  %3951 = vst [vmem:[#allocation16_spill] sm:$0xff] %v3302_v48  ;;  %v1043_v23 = vadd.f32 %v1012_v59, %v979_v21  ;;  %v1223_v40 = vmax.f32 %v3296_v55, %v1195_v61  ;;  %1363 = vperm.xlu0 %1963, %v3287_v43   ;;  %1318 = vperm.xlu1 %1964, %v3300_v63   ;;  %v3325_v63 = vld [vmem:[#allocation3 + $0x20] sm:$0xff] }
 0x274   :  { %3956 = vst [vmem:[#allocation20_spill] sm:$0xff] %v3325_v63  ;;  %vm3958_vm9 = vmmov %vm3945_vm0  ;;  %v3340_v55 = vld [vmem:[#allocation3 + $0x60] sm:$0xff] }
 0x275   :  { %1060 = vst.msk [vmem:[#allocation5] sm:$0xff] %vm3945_vm0, %v1043_v23  ;;  %vm1239_vm2 = vcmp.eq.f32.partialorder %v1223_v40, -inf  ;;  %v3327_v23 = vld [vmem:[#allocation3 + $0x10] sm:$0xff]  ;;  %3961 = vst [vmem:[#allocation24_spill] sm:$0xff] %v3340_v55 }
 0x276   :  { %1559 = vst.msk [vmem:[#allocation3 + $0x18] sm:$0xff] %vm3954_vm3, %v1223_v40  ;;  %v1209_v45 = vpop.xlane.xlu1 %1208  ;;  %v1211_v21 = vpop.xlane.xlu0 %1210  ;;  %v3317_v59 = vsel %vm1239_vm2, 0.0, %v1223_v40  ;;  %3957 = vst [vmem:[#allocation21_spill] sm:$0xff] %v3327_v23 }
 0x277   :  { %3955 = vst [vmem:[#allocation19_spill] sm:$0xff] %v3317_v59  ;;  %v1230_v61 = vmax.f32 %v3309_v10, %v1209_v45  ;;  %v1231_v51 = vmax.f32 %v3311_v7, %v1211_v21  ;;  %1358 = vperm.xlu1 %1964, %v3302_v48   ;;  %1333 = vperm.xlu0 %1963, %v3317_v59   ;;  %v3357_v10 = vld [vmem:[#allocation3 + $0x30] sm:$0xff]  ;;  %v3359_v7 = vld [vmem:[#allocation3 + $0x68] sm:$0xff] }
 0x278   :  { %3965 = vst [vmem:[#allocation27_spill] sm:$0xff] %v3357_v10  ;;  %3966 = vst [vmem:[#allocation28_spill] sm:$0xff] %v3359_v7 }
 0x279   :  { %1566 = vst.msk [vmem:[#allocation3 + $0x50] sm:$0xff] %vm3958_vm9, %v1230_v61  ;;  %vm1247_vm3 = vcmp.eq.f32.partialorder %v1231_v51, -inf  ;;  %vm1246_vm2 = vcmp.eq.f32.partialorder %v1230_v61, -inf  ;;  %vm3963_vm9 = vmmov %vm3945_vm0 }
 0x27a   :  { %1567 = vst.msk [vmem:[#allocation3 + $0x58] sm:$0xff] %vm3945_vm0, %v1231_v51  ;;  %v1197_v40 = vpop.xlane.xlu1 %1196  ;;  %v1193_v45 = vpop.xlane.xlu0 %1192  ;;  %v3331_v21 = vsel %vm1247_vm3, 0.0, %v1231_v51  ;;  %v3333_v58 = vsel %vm1246_vm2, 0.0, %v1230_v61 }
 0x27b   :  { %3959 = vst [vmem:[#allocation22_spill] sm:$0xff] %v3331_v21  ;;  %3960 = vst [vmem:[#allocation23_spill] sm:$0xff] %v3333_v58  ;;  %v1224_v48 = vmax.f32 %v3325_v63, %v1197_v40  ;;  %v1222_v27 = vmax.f32 %v3327_v23, %v1193_v45  ;;  %1373 = vperm.xlu0 %1963, %v3331_v21   ;;  %v3375_v63 = vld [vmem:[#allocation3 + $0x70] sm:$0xff]  ;;  %v3377_v23 = vld [vmem:[#allocation3 + $0x38] sm:$0xff] }
 0x27c   :  { %3970 = vst [vmem:[#allocation31_spill] sm:$0xff] %v3375_v63  ;;  %3971 = vst [vmem:[#allocation32_spill] sm:$0xff] %v3377_v23 }
 0x27d   :  { %1560 = vst.msk [vmem:[#allocation3 + $0x20] sm:$0xff] %vm3963_vm9, %v1224_v48  ;;  %vm1238_vm3 = vcmp.eq.f32.partialorder %v1222_v27, -inf  ;;  %vm1240_vm2 = vcmp.eq.f32.partialorder %v1224_v48, -inf  ;;  %vm3967_vm9 = vmmov %vm3945_vm0 }
 0x27e   :  { %1558 = vst.msk [vmem:[#allocation3 + $0x10] sm:$0xff] %vm3945_vm0, %v1222_v27  ;;  %v1213_v51 = vpop.xlane.xlu1 %1212  ;;  %v1199_v61 = vpop.xlane.xlu0 %1198  ;;  %v3348_v40 = vsel %vm1238_vm3, 0.0, %v1222_v27  ;;  %v3350_v45 = vsel %vm1240_vm2, 0.0, %v1224_v48 }
 0x27f   :  { %3964 = vst [vmem:[#allocation26_spill] sm:$0xff] %v3348_v40  ;;  %v1232_v59 = vmax.f32 %v3340_v55, %v1213_v51  ;;  %v1225_v21 = vmax.f32 %v3342_v6, %v1199_v61  ;;  %1328 = vperm.xlu1 %1964, %v3348_v40   ;;  %v3393_v55 = vld [vmem:[#allocation3 + $0x78] sm:$0xff] }
 0x280   :  { %3974 = vst [vmem:[#allocation34_spill] sm:$0xff] %v3393_v55 }
 0x281   :  { %1568 = vst.msk [vmem:[#allocation3 + $0x60] sm:$0xff] %vm3967_vm9, %v1232_v59  ;;  %vm1241_vm3 = vcmp.eq.f32.partialorder %v1225_v21, -inf  ;;  %vm1248_vm2 = vcmp.eq.f32.partialorder %v1232_v59, -inf  ;;  %vm3972_vm9 = vmmov %vm3945_vm0 }
 0x282   :  { %1561 = vst.msk [vmem:[#allocation3 + $0x28] sm:$0xff] %vm3945_vm0, %v1225_v21  ;;  %v1201_v48 = vpop.xlane.xlu1 %1200  ;;  %v1215_v27 = vpop.xlane.xlu0 %1214  ;;  %v3365_v51 = vsel %vm1241_vm3, 0.0, %v1225_v21  ;;  %v3367_v61 = vsel %vm1248_vm2, 0.0, %v1232_v59 }
 0x283   :  { %3968 = vst [vmem:[#allocation29_spill] sm:$0xff] %v3365_v51  ;;  %3969 = vst [vmem:[#allocation30_spill] sm:$0xff] %v3367_v61  ;;  %v1226_v43 = vmax.f32 %v3357_v10, %v1201_v48  ;;  %v1233_v40 = vmax.f32 %v3359_v7, %v1215_v27  ;;  %1368 = vperm.xlu1 %1964, %v3333_v58   ;;  %1343 = vperm.xlu0 %1963, %v3365_v51   ;;  %v1077_v10 = vld [vmem:[#allocation6 + $0x8] sm:$0xff] }
 0x285   :  { %1562 = vst.msk [vmem:[#allocation3 + $0x30] sm:$0xff] %vm3972_vm9, %v1226_v43  ;;  %vm1249_vm3 = vcmp.eq.f32.partialorder %v1233_v40, -inf  ;;  %vm1242_vm2 = vcmp.eq.f32.partialorder %v1226_v43, -inf  ;;  %vm3975_vm9 = vmmov %vm3945_vm0 }
 0x286   :  { %1569 = vst.msk [vmem:[#allocation3 + $0x68] sm:$0xff] %vm3945_vm0, %v1233_v40  ;;  %v1217_v59 = vpop.xlane.xlu1 %1216  ;;  %v1203_v48 = vpop.xlane.xlu0 %1202  ;;  %v3383_v27 = vsel %vm1249_vm3, 0.0, %v1233_v40  ;;  %v3385_v58 = vsel %vm1242_vm2, 0.0, %v1226_v43 }
 0x287   :  { %3973 = vst [vmem:[#allocation33_spill] sm:$0xff] %v3383_v27  ;;  %v1234_v16 = vmax.f32 %v3375_v63, %v1217_v59  ;;  %v1227_v51 = vmax.f32 %v3377_v23, %v1203_v48  ;;  %1338 = vperm.xlu1 %1964, %v3350_v45   ;;  %1383 = vperm.xlu0 %1963, %v3383_v27  }
 0x289   :  { %1570 = vst.msk [vmem:[#allocation3 + $0x70] sm:$0xff] %vm3975_vm9, %v1234_v16  ;;  %vm1243_vm3 = vcmp.eq.f32.partialorder %v1227_v51, -inf  ;;  %vm1250_vm2 = vcmp.eq.f32.partialorder %v1234_v16, -inf }
 0x28a   :  { %1563 = vst.msk [vmem:[#allocation3 + $0x38] sm:$0xff] %vm3945_vm0, %v1227_v51  ;;  %v898_v43 = vpop.permute.xlu1 %897  ;;  %v1219_v40 = vpop.xlane.xlu0 %1218  ;;  %v3399_v59 = vsel %vm1243_vm3, 0.0, %v1227_v51  ;;  %v3401_v48 = vsel %vm1250_vm2, 0.0, %v1234_v16  ;;  %v3978_v16 = vmov 0.0  }
 0x28b   :  { %3976 = vst [vmem:[#allocation35_spill] sm:$0xff] %v3399_v59  ;;  %3977 = vst [vmem:[#allocation36_spill] sm:$0xff] %v3401_v48  ;;  %vm926_vm8 = vcmp.eq.s32.totalorder %v898_v43, %v2848_v44  ;;  %v1235_v21 = vmax.f32 %v3393_v55, %v1219_v40  ;;  %1378 = vperm.xlu1 %1964, %v3367_v61   ;;  %1353 = vperm.xlu0 %1963, %v3399_v59  }
 0x28c   :  { %vm942_vm9 = vmand %vm3144_vm4, %vm926_vm8 }
 0x28d   :  { %1571 = vst.msk [vmem:[#allocation3 + $0x78] sm:$0xff] %vm3945_vm0, %v1235_v21  ;;  %vm1251_vm3 = vcmp.eq.f32.partialorder %v1235_v21, -inf  ;;  %v1816_v51 = vsel %vm942_vm9, 1.0, %v3978_v16  ;;  %vm3980_vm9 = vmmov %vm3945_vm0 }
 0x28e   :  { %v904_v43 = vpop.permute.xlu1 %903  ;;  %v3415_v40 = vsel %vm1251_vm3, 0.0, %v1235_v21  ;;  %v1095_v61 = vpop.xlane.xlu0 %1094  ;;  %v3418_v7 = vmul.f32 %v3094_v22, %v1816_v51 }
 0x28f   :  { %3979 = vst [vmem:[#allocation37_spill] sm:$0xff] %v3415_v40  ;;  %vm928_vm2 = vcmp.eq.s32.totalorder %v904_v43, %v2848_v44  ;;  %1348 = vperm.xlu1 %1964, %v3385_v58   ;;  %1393 = vperm.xlu0 %1963, %v3415_v40   ;;  %v1125_v6 = vadd.f32 %v1095_v61, %v1077_v10 }
 0x290   :  { %vm944_vm8 = vmand %vm3207_vm12, %vm928_vm2 }
 0x291   :  { %1141 = vst.msk [vmem:[#allocation6 + $0x8] sm:$0xff] %vm3980_vm9, %v1125_v6  ;;  %v1818_v21 = vsel %vm944_vm8, 1.0, %v3978_v16 }
 0x292   :  { %v907_v63 = vpop.permute.xlu1 %906  ;;  %v3430_v59 = vmul.f32 %v3127_v0, %v1818_v21 }
 0x293   :  { %vm929_vm0 = vcmp.eq.s32.totalorder %v907_v63, %v2848_v44  ;;  %1388 = vperm.xlu1 %1964, %v3401_v48  }
 0x294   :  { %vm945_vm3 = vmand %vm3228_vm7, %vm929_vm0 }
 0x295   :  { %v1819_v10 = vsel %vm945_vm3, 1.0, %v3978_v16 }
 0x296   :  { %v892_v61 = vpop.permute.xlu0 %891  ;;  %v3438_v43 = vmul.f32 %v1819_v10, %v3172_v38 }
 0x297   :  { %vm924_vm2 = vcmp.eq.s32.totalorder %v892_v61, %v2848_v44 }
 0x298   :  { %vm940_vm8 = vmand %vm3024_vm15, %vm924_vm2 }
 0x299   :  { %v1814_v6 = vsel %vm940_vm8, 1.0, %v3978_v16  ;;  %vm922_vm8 = vcmp.eq.s32.totalorder %v2875_v24, %v2848_v44 }
 0x29a   :  { %v901_v27 = vpop.permute.xlu0 %900  ;;  %v3445_v63 = vmul.f32 %v3043_v20, %v1814_v6 }
 0x29b   :  { %vm927_vm9 = vcmp.eq.s32.totalorder %v901_v27, %v2848_v44 }
 0x29c   :  { %vm943_vm0 = vmand %vm3191_vm1, %vm927_vm9  ;;  %vm917_vm9 = vcmp.eq.s32.totalorder %v2865_v28, %v2848_v44 }
 0x29d   :  { %v1817_v40 = vsel %vm943_vm0, 1.0, %v3978_v16  ;;  %vm938_vm0 = vmand %vm3235_vm13, %vm922_vm8 }
 0x29e   :  { %v910_v55 = vpop.permute.xlu0 %909  ;;  %v3452_v48 = vmul.f32 %v1817_v40, %v3135_v26 }
 0x29f   :  { %vm930_vm3 = vcmp.eq.s32.totalorder %v910_v55, %v2848_v44  ;;  %v3472_v55 = vsel %vm938_vm0, 1.0, %v3978_v16 }
 0x2a0   :  { %vm946_vm2 = vmand %vm3247_vm5, %vm930_vm3  ;;  %v1002_v34 = vmul.f32 %v3159_v25, %v3472_v55 }
 0x2a1   :  { %v1820_v61 = vsel %vm946_vm2, 1.0, %v3978_v16  ;;  %vm933_vm3 = vmand %vm3178_vm14, %vm917_vm9  ;;  %vm921_vm2 = vcmp.eq.s32.totalorder %v2873_v1, %v2848_v44  ;;  %vm923_vm9 = vcmp.eq.s32.totalorder %v2877_v47, %v2848_v44 }
 0x2a2   :  { %v3459_v23 = vmul.f32 %v3161_v60, %v1820_v61  ;;  %vm937_vm8 = vmand %vm3215_vm10, %vm921_vm2 }
 0x2a3   :  { %v3484_v28 = vsel %vm937_vm8, 1.0, %v3978_v16  ;;  %vm939_vm0 = vmand %vm3077_vm11, %vm923_vm9  ;;  %vm3981_vm8 = vnez %v3911_v8  ;;  %vm3982_vm9 = vnez %v3909_v39 }
 0x2a4   :  { %v3492_v1 = vsel %vm939_vm0, 1.0, %v3978_v16  ;;  %v1001_v57 = vmul.f32 %v3484_v28, %v3170_v49 }
 0x2a5   :  { %v1003_v30 = vmul.f32 %v3492_v1, %v3055_v32 }
 0x2ae   :  { %1098 = vadd.xlane.f32.xlu0 %v3084_v52  ;;  %v1807_v52 = vsel %vm933_vm3, 1.0, %v3978_v16  ;;  %vm925_vm3 = vcmp.eq.s32.totalorder %v2991_v50, %v2848_v44 }
 0x2af   :  { %vm941_vm2 = vmand %vm3155_vm6, %vm925_vm3  ;;  %v997_v47 = vmul.f32 %v1807_v52, %v3102_v31 }
 0x2b0   :  { %v3498_v24 = vsel %vm941_vm2, 1.0, %v3978_v16 }
 0x2b1   :  { %v1005_v14 = vmul.f32 %v3498_v24, %v3104_v53 }
 0x2b2   :  { %1102 = vadd.xlane.f32.xlu0 %v3117_v11 }
 0x2b6   :  { %1106 = vadd.xlane.f32.xlu0 %v3472_v55 }
 0x2b7   :  { %1096 = vadd.xlane.f32.xlu1 %v1807_v52 }
 0x2ba   :  { %1110 = vadd.xlane.f32.xlu0 %v1814_v6 }
 0x2bb   :  { %1100 = vadd.xlane.f32.xlu1 %v3121_v2 }
 0x2be   :  { %1114 = vadd.xlane.f32.xlu0 %v1816_v51 }
 0x2bf   :  { %1104 = vadd.xlane.f32.xlu1 %v3484_v28 }
 0x2c2   :  { %1118 = vadd.xlane.f32.xlu0 %v1818_v21 }
 0x2c3   :  { %1108 = vadd.xlane.f32.xlu1 %v3492_v1 }
 0x2c6   :  { %1122 = vadd.xlane.f32.xlu0 %v1820_v61 }
 0x2c7   :  { %1112 = vadd.xlane.f32.xlu1 %v3498_v24  ;;  %v1085_v24 = vld [vmem:[#allocation6 + $0x48] sm:$0xff] }
 0x2ca   :  { %1015 = vadd.xlane.f32.xlu0 %v997_v47 }
 0x2cb   :  { %1116 = vadd.xlane.f32.xlu1 %v1817_v40 }
 0x2ce   :  { %1019 = vadd.xlane.f32.xlu0 %v3150_v19 }
 0x2cf   :  { %1120 = vadd.xlane.f32.xlu1 %v1819_v10 }
 0x2d3   :  { %1013 = vadd.xlane.f32.xlu1 %v3071_v18 }
 0x2d7   :  { %1017 = vadd.xlane.f32.xlu1 %v3114_v5 }
 0x2db   :  { %1021 = vadd.xlane.f32.xlu1 %v3140_v42 }
 0x2ee   :  { %v1324_v44 = vpop.permute.xlu0 %1323 }
 0x2ef   :  { %v1397_v50 = vsub.f32 %v3041_v9, %v1324_v44 }
 0x2f1   :  { %v1414_v11 = vmul.f32 1.442695, %v1397_v50 }
 0x2f2   :  { %v1319_v2 = vpop.permute.xlu1 %1318  ;;  %v1364_v27 = vpop.permute.xlu0 %1363 }
 0x2f3   :  { %2093 = vpow2.f32 %v1414_v11  ;;  %v1396_v16 = vsub.f32 %v3053_v4, %v1319_v2  ;;  %v1405_v51 = vsub.f32 %v3043_v20, %v1364_v27 }
 0x2f5   :  { %v1430_v40 = vmul.f32 1.442695, %v1405_v51  ;;  %v1412_v19 = vmul.f32 1.442695, %v1396_v16 }
 0x2f6   :  { %v1359_v21 = vpop.permute.xlu1 %1358  ;;  %v1334_v10 = vpop.permute.xlu0 %1333 }
 0x2f7   :  { %v1404_v18 = vsub.f32 %v3055_v32, %v1359_v21  ;;  %v1399_v5 = vsub.f32 %v3092_v37, %v1334_v10  ;;  %2095 = vpow2.f32 %v1430_v40 }
 0x2f8   :  { %2097 = vpow2.f32 %v1412_v19 }
 0x2f9   :  { %v1428_v42 = vmul.f32 1.442695, %v1404_v18  ;;  %v1418_v9 = vmul.f32 1.442695, %v1399_v5 }
 0x2fa   :  { %v1374_v6 = vpop.permute.xlu0 %1373 }
 0x2fb   :  { %2099 = vpow2.f32 %v1428_v42  ;;  %v1407_v61 = vsub.f32 %v3094_v22, %v1374_v6 }
 0x2fc   :  { %2101 = vpow2.f32 %v1418_v9 }
 0x2fd   :  { %v2094_v52 = vpop.eup %2093  ;;  %v1434_v4 = vmul.f32 1.442695, %v1407_v61 }
 0x2fe   :  { %v1329_v20 = vpop.permute.xlu1 %1328  ;;  %v1445_v47 = vsel %vm3981_vm8, %v2094_v52, 0.0 }
 0x2ff   :  { %v1398_v44 = vsub.f32 %v3102_v31, %v1329_v20  ;;  %1494 = vadd.xlane.f32.xlu0 %v1445_v47  ;;  %2103 = vpow2.f32 %v1434_v4 }
 0x301   :  { %v1416_v50 = vmul.f32 1.442695, %v1398_v44  ;;  %v2096_v37 = vpop.eup %2095 }
 0x302   :  { %v1369_v11 = vpop.permute.xlu1 %1368  ;;  %v1344_v2 = vpop.permute.xlu0 %1343  ;;  %v1453_v16 = vsel %vm3024_vm15, %v2096_v37, 0.0  ;;  %vm3983_vm15 = vnez %v3913_v33 }
 0x303   :  { %2105 = vpow2.f32 %v1416_v50  ;;  %v1406_v27 = vsub.f32 %v3104_v53, %v1369_v11  ;;  %v1401_v22 = vsub.f32 %v3123_v35, %v1344_v2  ;;  %v2098_v51 = vpop.eup %2097  ;;  %1510 = vadd.xlane.f32.xlu0 %v1453_v16 }
 0x304   :  { %v1444_v17 = vsel %vm3982_vm9, %v2098_v51, 0.0 }
 0x305   :  { %v2100_v8 = vpop.eup %2099  ;;  %v1432_v40 = vmul.f32 1.442695, %v1406_v27  ;;  %v1422_v19 = vmul.f32 1.442695, %v1401_v22 }
 0x306   :  { %v1339_v31 = vpop.permute.xlu1 %1338  ;;  %v1384_v21 = vpop.permute.xlu0 %1383  ;;  %v1452_v10 = vsel %vm3077_vm11, %v2100_v8, 0.0  ;;  %vm3984_vm11 = vnez %v3919_v3 }
 0x307   :  { %2107 = vpow2.f32 %v1432_v40  ;;  %v1400_v18 = vsub.f32 %v3133_v12, %v1339_v31  ;;  %v1409_v5 = vsub.f32 %v3127_v0, %v1384_v21  ;;  %1508 = vadd.xlane.f32.xlu1 %v1452_v10  ;;  %v2102_v35 = vpop.eup %2101  ;;  %1492 = vadd.xlane.f32.xlu0 %v1444_v17 }
 0x308   :  { %2109 = vpow2.f32 %v1422_v19  ;;  %v1447_v12 = vsel %vm3983_vm15, %v2102_v35, 0.0 }
 0x309   :  { %v1420_v42 = vmul.f32 1.442695, %v1400_v18  ;;  %v1438_v9 = vmul.f32 1.442695, %v1409_v5  ;;  %v2104_v0 = vpop.eup %2103 }
 0x30a   :  { %v1379_v6 = vpop.permute.xlu1 %1378  ;;  %v1354_v61 = vpop.permute.xlu0 %1353  ;;  %v1455_v33 = vsel %vm3144_vm4, %v2104_v0, 0.0  ;;  %vm3985_vm4 = vnez %v3921_v15 }
 0x30b   :  { %2111 = vpow2.f32 %v1420_v42  ;;  %v1408_v29 = vsub.f32 %v3135_v26, %v1379_v6  ;;  %v1403_v52 = vsub.f32 %v3159_v25, %v1354_v61  ;;  %1498 = vadd.xlane.f32.xlu0 %v1447_v12  ;;  %v1079_v25 = vld [vmem:[#allocation6 + $0x18] sm:$0xff]  ;;  %v1082_v61 = vld [vmem:[#allocation6 + $0x30] sm:$0xff] }
 0x30c   :  { %2113 = vpow2.f32 %v1438_v9  ;;  %v1087_v6 = vld [vmem:[#allocation6 + $0x58] sm:$0xff] }
 0x30d   :  { %v2106_v39 = vpop.eup %2105  ;;  %v1436_v4 = vmul.f32 1.442695, %v1408_v29  ;;  %v1426_v20 = vmul.f32 1.442695, %v1403_v52 }
 0x30e   :  { %v1349_v47 = vpop.permute.xlu1 %1348  ;;  %v1394_v44 = vpop.permute.xlu0 %1393  ;;  %v1446_v50 = vsel %vm3178_vm14, %v2106_v39, 0.0  ;;  %v1089_v39 = vld [vmem:[#allocation6 + $0x68] sm:$0xff] }
 0x30f   :  { %2115 = vpow2.f32 %v1436_v4  ;;  %v1402_v37 = vsub.f32 %v3170_v49, %v1349_v47  ;;  %v1411_v26 = vsub.f32 %v3161_v60, %v1394_v44  ;;  %1496 = vadd.xlane.f32.xlu1 %v1446_v50  ;;  %1514 = vadd.xlane.f32.xlu0 %v1455_v33  ;;  %v1084_v4 = vld [vmem:[#allocation6 + $0x40] sm:$0xff] }
 0x310   :  { %2117 = vpow2.f32 %v1426_v20 }
 0x311   :  { %v2108_v11 = vpop.eup %2107  ;;  %v1424_v2 = vmul.f32 1.442695, %v1402_v37  ;;  %v1442_v27 = vmul.f32 1.442695, %v1411_v26  ;;  %v1091_v37 = vld [vmem:[#allocation6 + $0x78] sm:$0xff]  ;;  %v1086_v26 = vld [vmem:[#allocation6 + $0x50] sm:$0xff] }
 0x312   :  { %v2110_v22 = vpop.eup %2109  ;;  %v1389_v16 = vpop.permute.xlu1 %1388  ;;  %v1454_v62 = vsel %vm3155_vm6, %v2108_v11, 0.0 }
 0x313   :  { %2119 = vpow2.f32 %v1424_v2  ;;  %v1410_v51 = vsub.f32 %v3172_v38, %v1389_v16  ;;  %1512 = vadd.xlane.f32.xlu1 %v1454_v62  ;;  %v1449_v60 = vsel %vm3984_vm11, %v2110_v22, 0.0  ;;  %v981_v22 = vld [vmem:[#allocation5 + $0x10] sm:$0xff]  ;;  %v1088_v16 = vld [vmem:[#allocation6 + $0x60] sm:$0xff] }
 0x314   :  { %2121 = vpow2.f32 %v1442_v27  ;;  %1502 = vadd.xlane.f32.xlu0 %v1449_v60 }
 0x315   :  { %v2112_v54 = vpop.eup %2111  ;;  %v1440_v8 = vmul.f32 1.442695, %v1410_v51 }
 0x316   :  { %v2114_v40 = vpop.eup %2113  ;;  %v1448_v19 = vsel %vm3985_vm4, %v2112_v54, 0.0 }
 0x317   :  { %2123 = vpow2.f32 %v1440_v8  ;;  %1500 = vadd.xlane.f32.xlu1 %v1448_v19  ;;  %v1457_v13 = vsel %vm3207_vm12, %v2114_v40, 0.0  ;;  %v983_v8 = vld [vmem:[#allocation5 + $0x20] sm:$0xff]  ;;  %v1090_v40 = vld [vmem:[#allocation6 + $0x70] sm:$0xff] }
 0x318   :  { %1518 = vadd.xlane.f32.xlu0 %v1457_v13 }
 0x319   :  { %v2116_v31 = vpop.eup %2115 }
 0x31a   :  { %v2118_v38 = vpop.eup %2117  ;;  %v1456_v3 = vsel %vm3191_vm1, %v2116_v31, 0.0 }
 0x31b   :  { %1516 = vadd.xlane.f32.xlu1 %v1456_v3  ;;  %v1451_v21 = vsel %vm3235_vm13, %v2118_v38, 0.0  ;;  %vm3986_vm13 = vcmask 7168   ;;  %v980_v3 = vld [vmem:[#allocation5 + $0x8] sm:$0xff] }
 0x31c   :  { %1506 = vadd.xlane.f32.xlu0 %v1451_v21 }
 0x31d   :  { %v2120_v10 = vpop.eup %2119 }
 0x31e   :  { %v2122_v18 = vpop.eup %2121  ;;  %v1450_v15 = vsel %vm3215_vm10, %v2120_v10, 0.0 }
 0x31f   :  { %1504 = vadd.xlane.f32.xlu1 %v1450_v15  ;;  %v1459_v36 = vsel %vm3247_vm5, %v2122_v18, 0.0  ;;  %v982_v18 = vld [vmem:[#allocation5 + $0x18] sm:$0xff] }
 0x320   :  { %1522 = vadd.xlane.f32.xlu0 %v1459_v36 }
 0x321   :  { %v2124_v5 = vpop.eup %2123 }
 0x322   :  { %v1458_v17 = vsel %vm3228_vm7, %v2124_v5, 0.0  ;;  %vm3987_vm7 = vmmov %vm3986_vm13  ;;  %v984_v5 = vld [vmem:[#allocation5 + $0x28] sm:$0xff] }
 0x323   :  { %1520 = vadd.xlane.f32.xlu1 %v1458_v17  ;;  %vm3988_vm10 = vmmov %vm3987_vm7 }
 0x324   :  { %1023 = vadd.xlane.f32.xlu0 %v1001_v57  ;;  %vm3989_vm6 = vmmov %vm3987_vm7 }
 0x325   :  { %vm3990_vm14 = vmmov %vm3989_vm6 }
 0x326   :  { %vm3991_vm1 = vmmov %vm3989_vm6 }
 0x327   :  { %1025 = vadd.xlane.f32.xlu1 %v1002_v34  ;;  %vm3992_vm12 = vmmov %vm3991_vm1  ;;  %v4005_v34 = vsub.f32 %v3273_v56, %v3285_v46 }
 0x328   :  { %1027 = vadd.xlane.f32.xlu0 %v1003_v30  ;;  %vm3993_vm5 = vmmov %vm3991_vm1 }
 0x329   :  { %vm3994_vm0 = vmmov %vm3991_vm1  ;;  %v1286_v30 = vmul.f32 1.442695, %v4005_v34  ;;  %v3628_v34 = vld [vmem:[#allocation6 + $0x8] sm:$0xff] }
 0x32a   :  { %vm3995_vm3 = vmmov %vm3994_vm0 }
 0x32b   :  { %1029 = vadd.xlane.f32.xlu1 %v3445_v63  ;;  %v1083_v63 = vld [vmem:[#allocation6 + $0x38] sm:$0xff]  ;;  %vm3996_vm2 = vmmov %vm3994_vm0  ;;  %2125 = vpow2.f32 %v1286_v30 }
 0x32c   :  { %1031 = vadd.xlane.f32.xlu0 %v1005_v14  ;;  %vm3997_vm8 = vmmov %vm3994_vm0  ;;  %v4006_v14 = vld [vmem:[#allocation10_spill] sm:$0xff] }
 0x32d   :  { %vm3998_vm9 = vmmov %vm3994_vm0 }
 0x32e   :  { %vm3999_vm15 = vmmov %vm3994_vm0 }
 0x32f   :  { %1033 = vadd.xlane.f32.xlu1 %v3418_v7  ;;  %v1078_v7 = vld [vmem:[#allocation6 + $0x10] sm:$0xff]  ;;  %vm4000_vm11 = vmmov %vm3994_vm0 }
 0x330   :  { %1035 = vadd.xlane.f32.xlu0 %v3452_v48  ;;  %vm4001_vm4 = vmmov %vm3994_vm0 }
 0x333   :  { %1037 = vadd.xlane.f32.xlu1 %v3430_v59 }
 0x334   :  { %1039 = vadd.xlane.f32.xlu0 %v3438_v43 }
 0x337   :  { %1041 = vadd.xlane.f32.xlu1 %v3459_v23  ;;  %v1080_v23 = vld [vmem:[#allocation6 + $0x20] sm:$0xff] }
 0x33b   :  { %v1099_v32 = vpop.xlane.xlu0 %1098 }
 0x33c   :  { %v1127_v49 = vadd.f32 %v1099_v32, %v1079_v25  ;;  %v4007_v25 = vld [vmem:[#allocation13_spill] sm:$0xff] }
 0x33d   :  { %v4008_v32 = vsub.f32 %v4006_v14, %v4007_v25  ;;  %v4040_v25 = vld [vmem:[#allocation27_spill] sm:$0xff] }
 0x33e   :  { %1143 = vst.msk [vmem:[#allocation6 + $0x18] sm:$0xff] %vm3986_vm13, %v1127_v49  ;;  %vm4002_vm13 = vmmov %vm3994_vm0 }
 0x33f   :  { %v1103_v53 = vpop.xlane.xlu0 %1102  ;;  %v1302_v49 = vmul.f32 1.442695, %v4008_v32  ;;  %v4041_v32 = vsub.f32 %v4040_v25, %v3385_v58 }
 0x340   :  { %v1129_v55 = vadd.f32 %v1103_v53, %v1081_v41  ;;  %v4009_v41 = vld [vmem:[#allocation11_spill] sm:$0xff]  ;;  %v4010_v53 = vld [vmem:[#allocation16_spill] sm:$0xff] }
 0x341   :  { %2127 = vpow2.f32 %v1302_v49  ;;  %v1296_v49 = vmul.f32 1.442695, %v4041_v32 }
 0x342   :  { %1145 = vst.msk [vmem:[#allocation6 + $0x28] sm:$0xff] %vm3987_vm7, %v1129_v55  ;;  %vm4003_vm7 = vmmov %vm3994_vm0  ;;  %v4011_v55 = vsub.f32 %v4009_v41, %v4010_v53 }
 0x343   :  { %v1107_v28 = vpop.xlane.xlu0 %1106 }
 0x344   :  { %v1131_v48 = vadd.f32 %v1107_v28, %v1083_v63  ;;  %v1097_v1 = vpop.xlane.xlu1 %1096  ;;  %v1300_v63 = vmul.f32 1.442695, %v4011_v55  ;;  %v4013_v28 = vld [vmem:[#allocation15_spill] sm:$0xff] }
 0x345   :  { %v1126_v59 = vadd.f32 %v1097_v1, %v1078_v7  ;;  %v4012_v7 = vld [vmem:[#allocation12_spill] sm:$0xff]  ;;  %v3634_v41 = vld [vmem:[#allocation6 + $0x18] sm:$0xff] }
 0x346   :  { %1147 = vst.msk [vmem:[#allocation6 + $0x38] sm:$0xff] %vm3988_vm10, %v1131_v48  ;;  %vm4004_vm10 = vmmov %vm3994_vm0  ;;  %v4014_v48 = vsub.f32 %v4012_v7, %v4013_v28  ;;  %2129 = vpow2.f32 %v1300_v63  ;;  %v1463_v63 = vld [vmem:[#allocation4 + $0x18] sm:$0xff]  ;;  %v4042_v7 = vld [vmem:[#allocation32_spill] sm:$0xff] }
 0x347   :  { %1142 = vst.msk [vmem:[#allocation6 + $0x10] sm:$0xff] %vm3989_vm6, %v1126_v59  ;;  %v1111_v43 = vpop.xlane.xlu0 %1110  ;;  %v4015_v59 = vld [vmem:[#allocation14_spill] sm:$0xff]  ;;  %v4043_v28 = vld [vmem:[#allocation35_spill] sm:$0xff] }
 0x348   :  { %v1133_v35 = vadd.f32 %v1111_v43, %v1085_v24  ;;  %v1101_v42 = vpop.xlane.xlu1 %1100  ;;  %v1284_v1 = vmul.f32 1.442695, %v4014_v48  ;;  %v4016_v24 = vld [vmem:[#allocation19_spill] sm:$0xff]  ;;  %v4044_v48 = vsub.f32 %v4042_v7, %v4043_v28 }
 0x349   :  { %v1128_v9 = vadd.f32 %v1101_v42, %v1080_v23  ;;  %v4017_v56 = vsub.f32 %v4015_v59, %v4016_v24  ;;  %v2126_v23 = vpop.eup %2125  ;;  %v1461_v43 = vld [vmem:[#allocation4 + $0x8] sm:$0xff]  ;;  %v4019_v42 = vld [vmem:[#allocation26_spill] sm:$0xff] }
 0x34a   :  { %1149 = vst.msk [vmem:[#allocation6 + $0x48] sm:$0xff] %vm3990_vm14, %v1133_v35  ;;  %2131 = vpow2.f32 %v1284_v1  ;;  %v4018_v35 = vld [vmem:[#allocation21_spill] sm:$0xff]  ;;  %vm4030_vm14 = vmmov %vm3994_vm0  ;;  %v1298_v1 = vmul.f32 1.442695, %v4044_v48  ;;  %v3639_v59 = vld [vmem:[#allocation6 + $0x28] sm:$0xff] }
 0x34b   :  { %1144 = vst.msk [vmem:[#allocation6 + $0x20] sm:$0xff] %vm3991_vm1, %v1128_v9  ;;  %v1115_v29 = vpop.xlane.xlu0 %1114  ;;  %v1290_v46 = vmul.f32 1.442695, %v4017_v56  ;;  %v4020_v9 = vsub.f32 %v4018_v35, %v4019_v42  ;;  %vm4039_vm1 = vmmov %vm3994_vm0  ;;  %v4049_v42 = vld [vmem:[#allocation34_spill] sm:$0xff] }
 0x34c   :  { %v1135_v52 = vadd.f32 %v1115_v29, %v1087_v6  ;;  %v1105_v12 = vpop.xlane.xlu1 %1104  ;;  %v4021_v29 = vld [vmem:[#allocation18_spill] sm:$0xff] }
 0x34d   :  { %v1130_v0 = vadd.f32 %v1105_v12, %v1082_v61  ;;  %v1288_v6 = vmul.f32 1.442695, %v4020_v9  ;;  %v3605_v61 = vld [vmem:[#allocation6] sm:$0xff]  ;;  %2133 = vpow2.f32 %v1290_v46  ;;  %v4045_v46 = vld [vmem:[#allocation31_spill] sm:$0xff]  ;;  %v4050_v9 = vld [vmem:[#allocation37_spill] sm:$0xff] }
 0x34e   :  { %1151 = vst.msk [vmem:[#allocation6 + $0x58] sm:$0xff] %vm3992_vm12, %v1135_v52  ;;  %v4022_v52 = vld [vmem:[#allocation22_spill] sm:$0xff]  ;;  %vm1591_vm6 = vcmp.eq.f32.partialorder %v3605_v61, 0.0  ;;  %vm1592_vm12 = vcmp.eq.f32.partialorder %v3628_v34, 0.0 }
 0x34f   :  { %1146 = vst.msk [vmem:[#allocation6 + $0x30] sm:$0xff] %vm3993_vm5, %v1130_v0  ;;  %v1119_v20 = vpop.xlane.xlu0 %1118  ;;  %v4023_v12 = vsub.f32 %v4021_v29, %v4022_v52  ;;  %2135 = vpow2.f32 %v1288_v6  ;;  %vm4048_vm5 = vmmov %vm3994_vm0  ;;  %v4051_v6 = vsub.f32 %v4049_v42, %v4050_v9  ;;  %v3650_v52 = vld [vmem:[#allocation6 + $0x38] sm:$0xff] }
 0x350   :  { %v1137_v47 = vadd.f32 %v1119_v20, %v1089_v39  ;;  %v1109_v44 = vpop.xlane.xlu1 %1108  ;;  %v1477_v39 = vmul.f32 %v2126_v23, %v1461_v43  ;;  %v2128_v20 = vpop.eup %2127  ;;  %v4046_v23 = vld [vmem:[#allocation36_spill] sm:$0xff]  ;;  %v1467_v9 = vld [vmem:[#allocation4 + $0x38] sm:$0xff] }
 0x351   :  { %v1132_v50 = vadd.f32 %v1109_v44, %v1084_v4  ;;  %v1306_v0 = vmul.f32 1.442695, %v4023_v12  ;;  %v1469_v44 = vld [vmem:[#allocation4 + $0x48] sm:$0xff]  ;;  %v4047_v58 = vsub.f32 %v4045_v46, %v4046_v23  ;;  %v1314_v29 = vmul.f32 1.442695, %v4051_v6  ;;  %v1472_v23 = vld [vmem:[#allocation4 + $0x60] sm:$0xff] }
 0x352   :  { %1153 = vst.msk [vmem:[#allocation6 + $0x68] sm:$0xff] %vm3994_vm0, %v1137_v47  ;;  %vm1594_vm0 = vcmp.eq.f32.partialorder %v3634_v41, 0.0 }
 0x353   :  { %1148 = vst.msk [vmem:[#allocation6 + $0x40] sm:$0xff] %vm3995_vm3, %v1132_v50  ;;  %v1123_v33 = vpop.xlane.xlu0 %1122  ;;  %v4024_v50 = vld [vmem:[#allocation17_spill] sm:$0xff]  ;;  %2137 = vpow2.f32 %v1306_v0  ;;  %v1312_v43 = vmul.f32 1.442695, %v4047_v58  ;;  %vm4052_vm3 = vmmov %vm4039_vm1  ;;  %v1462_v0 = vld [vmem:[#allocation4 + $0x10] sm:$0xff] }
 0x354   :  { %v1139_v11 = vadd.f32 %v1123_v33, %v1091_v37  ;;  %v1113_v2 = vpop.xlane.xlu1 %1112  ;;  %v4025_v37 = vld [vmem:[#allocation23_spill] sm:$0xff] }
 0x355   :  { %v1134_v27 = vadd.f32 %v1113_v2, %v1086_v26  ;;  %v4026_v26 = vsub.f32 %v4024_v50, %v4025_v37  ;;  %v4028_v2 = vld [vmem:[#allocation29_spill] sm:$0xff]  ;;  %v1610_v37 = vsel %vm1594_vm0, 1.0, %v3634_v41 }
 0x356   :  { %1155 = vst.msk [vmem:[#allocation6 + $0x78] sm:$0xff] %vm3996_vm2, %v1139_v11  ;;  %v4027_v11 = vld [vmem:[#allocation25_spill] sm:$0xff]  ;;  %vm1596_vm2 = vcmp.eq.f32.partialorder %v3639_v59, 0.0  ;;  %v3689_v7 = vld [vmem:[#allocation6 + $0x30] sm:$0xff] }
 0x357   :  { %1150 = vst.msk [vmem:[#allocation6 + $0x50] sm:$0xff] %vm3997_vm8, %v1134_v27  ;;  %v1016_v62 = vpop.xlane.xlu0 %1015  ;;  %v1304_v33 = vmul.f32 1.442695, %v4026_v26  ;;  %v4029_v27 = vsub.f32 %v4027_v11, %v4028_v2  ;;  %vm1598_vm8 = vcmp.eq.f32.partialorder %v3650_v52, 0.0  ;;  %v1612_v11 = vsel %vm1596_vm2, 1.0, %v3639_v59  ;;  %v3662_v2 = vld [vmem:[#allocation6 + $0x48] sm:$0xff] }
 0x358   :  { %v1045_v51 = vadd.f32 %v1016_v62, %v981_v22  ;;  %v1117_v60 = vpop.xlane.xlu1 %1116  ;;  %v1485_v62 = vmul.f32 %v2128_v20, %v1469_v44  ;;  %v1471_v20 = vld [vmem:[#allocation4 + $0x58] sm:$0xff]  ;;  %v3657_v44 = vld [vmem:[#allocation6 + $0x10] sm:$0xff] }
 0x359   :  { %v1136_v54 = vadd.f32 %v1117_v60, %v1088_v16  ;;  %v1294_v22 = vmul.f32 1.442695, %v4029_v27  ;;  %v2130_v16 = vpop.eup %2129  ;;  %2139 = vpow2.f32 %v1304_v33 }
 0x35a   :  { %1062 = vst.msk [vmem:[#allocation5 + $0x10] sm:$0xff] %vm3998_vm9, %v1045_v51  ;;  %v1468_v51 = vld [vmem:[#allocation4 + $0x40] sm:$0xff]  ;;  %v2132_v60 = vpop.eup %2131  ;;  %vm4053_vm9 = vmmov %vm4039_vm1 }
 0x35b   :  { %1152 = vst.msk [vmem:[#allocation6 + $0x60] sm:$0xff] %vm3999_vm15, %v1136_v54  ;;  %v1020_v19 = vpop.xlane.xlu0 %1019  ;;  %v1607_v54 = vsel %vm1591_vm6, 1.0, %v3605_v61  ;;  %2141 = vpow2.f32 %v1294_v22  ;;  %v2134_v14 = vpop.eup %2133  ;;  %vm1593_vm15 = vcmp.eq.f32.partialorder %v3657_v44, 0.0  ;;  %vm4056_vm6 = vmmov %vm4039_vm1 }
 0x35c   :  { %v1047_v13 = vadd.f32 %v1020_v19, %v983_v8  ;;  %v1121_v31 = vpop.xlane.xlu1 %1120  ;;  %v4031_v8 = vld [vmem:[#allocation20_spill] sm:$0xff]  ;;  %2143 = vrcp.f32 %v1607_v54  ;;  %v2136_v35 = vpop.eup %2135  ;;  %v1479_v12 = vmul.f32 %v2134_v14, %v1463_v63 }
 0x35d   :  { %v1138_v38 = vadd.f32 %v1121_v31, %v1090_v40  ;;  %v4032_v40 = vsub.f32 %v4031_v8, %v3350_v45  ;;  %v1460_v31 = vld [vmem:[#allocation4] sm:$0xff]  ;;  %v1478_v26 = vmul.f32 %v2136_v35, %v1462_v0  ;;  %v1465_v8 = vld [vmem:[#allocation4 + $0x28] sm:$0xff] }
 0x35e   :  { %1064 = vst.msk [vmem:[#allocation5 + $0x20] sm:$0xff] %vm4000_vm11, %v1047_v13  ;;  %v1476_v30 = vmul.f32 %v2132_v60, %v1460_v31  ;;  %vm1600_vm11 = vcmp.eq.f32.partialorder %v3662_v2, 0.0 }
 0x35f   :  { %1154 = vst.msk [vmem:[#allocation6 + $0x70] sm:$0xff] %vm4001_vm4, %v1138_v38  ;;  %v1292_v19 = vmul.f32 1.442695, %v4032_v40  ;;  %v4033_v38 = vld [vmem:[#allocation28_spill] sm:$0xff]  ;;  %vm4054_vm4 = vmmov %vm4039_vm1  ;;  %v1616_v25 = vsel %vm1600_vm11, 1.0, %v3662_v2 }
 0x360   :  { %v1014_v21 = vpop.xlane.xlu1 %1013  ;;  %vm4060_vm2 = vmmov %vm4054_vm4 }
 0x361   :  { %v1044_v10 = vadd.f32 %v1014_v21, %v980_v3  ;;  %v4034_v3 = vld [vmem:[#allocation33_spill] sm:$0xff]  ;;  %2145 = vpow2.f32 %v1292_v19  ;;  %v1614_v19 = vsel %vm1598_vm8, 1.0, %v3650_v52  ;;  %vm4061_vm8 = vmmov %vm4060_vm2 }
 0x362   :  { %v4035_v21 = vsub.f32 %v4033_v38, %v4034_v3  ;;  %v3674_v38 = vld [vmem:[#allocation6 + $0x58] sm:$0xff]  ;;  %vm4063_vm11 = vmmov %vm4060_vm2 }
 0x363   :  { %1061 = vst.msk [vmem:[#allocation5 + $0x8] sm:$0xff] %vm4002_vm13, %v1044_v10 }
 0x364   :  { %v1018_v15 = vpop.xlane.xlu1 %1017  ;;  %v1310_v10 = vmul.f32 1.442695, %v4035_v21 }
 0x365   :  { %v1046_v36 = vadd.f32 %v1018_v15, %v982_v18  ;;  %v1484_v15 = vmul.f32 %v2130_v16, %v1468_v51  ;;  %v1470_v16 = vld [vmem:[#allocation4 + $0x50] sm:$0xff]  ;;  %v3666_v51 = vld [vmem:[#allocation6 + $0x20] sm:$0xff] }
 0x366   :  { %2147 = vpow2.f32 %v1310_v10  ;;  %vm1595_vm13 = vcmp.eq.f32.partialorder %v3666_v51, 0.0 }
 0x367   :  { %1063 = vst.msk [vmem:[#allocation5 + $0x18] sm:$0xff] %vm4003_vm7, %v1046_v36  ;;  %v4036_v36 = vld [vmem:[#allocation24_spill] sm:$0xff]  ;;  %vm4055_vm7 = vmmov %vm4039_vm1  ;;  %v1611_v63 = vsel %vm1595_vm13, 1.0, %v3666_v51 }
 0x368   :  { %v1022_v57 = vpop.xlane.xlu1 %1021  ;;  %vm4064_vm13 = vmmov %vm4060_vm2 }
 0x369   :  { %v1048_v17 = vadd.f32 %v1022_v57, %v984_v5  ;;  %v4037_v5 = vld [vmem:[#allocation30_spill] sm:$0xff] }
 0x36a   :  { %v4038_v57 = vsub.f32 %v4036_v36, %v4037_v5  ;;  %v1464_v5 = vld [vmem:[#allocation4 + $0x20] sm:$0xff] }
 0x36b   :  { %1065 = vst.msk [vmem:[#allocation5 + $0x28] sm:$0xff] %vm4004_vm10, %v1048_v17  ;;  %vm1602_vm10 = vcmp.eq.f32.partialorder %v3674_v38, 0.0 }
 0x36c   :  { %v1308_v17 = vmul.f32 1.442695, %v4038_v57 }
 0x38c   :  { %v1495_v4 = vpop.xlane.xlu0 %1494 }
 0x38d   :  { %v1525_v47 = vadd.f32 %v1495_v4, %v1477_v39  ;;  %v2138_v39 = vpop.eup %2137 }
 0x38e   :  { %v2140_v33 = vpop.eup %2139  ;;  %v1487_v22 = vmul.f32 %v2138_v39, %v1471_v20  ;;  %v3700_v20 = vld [vmem:[#allocation6 + $0x68] sm:$0xff] }
 0x38f   :  { %1541 = vst.msk [vmem:[#allocation4 + $0x8] sm:$0xff] %vm4030_vm14, %v1525_v47  ;;  %v1608_v47 = vsel %vm1592_vm12, 1.0, %v3628_v34  ;;  %v1486_v21 = vmul.f32 %v2140_v33, %v1470_v16  ;;  %vm4057_vm14 = vmmov %vm4039_vm1  ;;  %v3705_v33 = vld [vmem:[#allocation6 + $0x40] sm:$0xff]  ;;  %vm1604_vm0 = vcmp.eq.f32.partialorder %v3700_v20, 0.0 }
 0x390   :  { %v1511_v13 = vpop.xlane.xlu0 %1510  ;;  %vm4058_vm12 = vmmov %vm4052_vm3 }
 0x391   :  { %v1533_v18 = vadd.f32 %v1511_v13, %v1485_v62  ;;  %v2142_v62 = vpop.eup %2141 }
 0x392   :  { %v3668_v40 = vpop.eup %2143  ;;  %v1481_v36 = vmul.f32 %v2142_v62, %v1465_v8  ;;  %v1475_v8 = vld [vmem:[#allocation4 + $0x78] sm:$0xff] }
 0x393   :  { %1549 = vst.msk [vmem:[#allocation4 + $0x48] sm:$0xff] %vm4039_vm1, %v1533_v18  ;;  %v2146_v31 = vpop.eup %2145  ;;  %v1609_v18 = vsel %vm1593_vm15, 1.0, %v3657_v44  ;;  %vm1597_vm1 = vcmp.eq.f32.partialorder %v3689_v7, 0.0 }
 0x394   :  { %v1509_v45 = vpop.xlane.xlu1 %1508  ;;  %v1493_v55 = vpop.xlane.xlu0 %1492  ;;  %v1480_v48 = vmul.f32 %v2146_v31, %v1464_v5  ;;  %v1613_v62 = vsel %vm1597_vm1, 1.0, %v3689_v7  ;;  %v1474_v5 = vld [vmem:[#allocation4 + $0x70] sm:$0xff] }
 0x395   :  { %v1532_v53 = vadd.f32 %v1509_v45, %v1484_v15  ;;  %v1524_v56 = vadd.f32 %v1493_v55, %v1476_v30  ;;  %v2148_v10 = vpop.eup %2147  ;;  %v1473_v30 = vld [vmem:[#allocation4 + $0x68] sm:$0xff] }
 0x396   :  { %v1640_v24 = vld [vmem:[#allocation4 + $0x8] sm:$0xff]  ;;  %v1489_v46 = vmul.f32 %v2148_v10, %v1473_v30 }
 0x397   :  { %2149 = vlog2.f32 %v1640_v24  ;;  %1548 = vst.msk [vmem:[#allocation4 + $0x40] sm:$0xff] %vm4048_vm5, %v1532_v53  ;;  %v1624_v55 = vld [vmem:[#allocation3 + $0x8] sm:$0xff]  ;;  %vm4059_vm5 = vmmov %vm4052_vm3 }
 0x398   :  { %2151 = vpow2.f32 %v1308_v17  ;;  %1540 = vst.msk [vmem:[#allocation4] sm:$0xff] %vm4052_vm3, %v1524_v56  ;;  %v1499_v4 = vpop.xlane.xlu0 %1498  ;;  %vm1599_vm3 = vcmp.eq.f32.partialorder %v3705_v33, 0.0 }
 0x399   :  { %2153 = vpow2.f32 %v1296_v49  ;;  %v1527_v50 = vadd.f32 %v1499_v4, %v1479_v12 }
 0x39a   :  { %2155 = vpow2.f32 %v1298_v1 }
 0x39b   :  { %2157 = vpow2.f32 %v1312_v43  ;;  %1543 = vst.msk [vmem:[#allocation4 + $0x18] sm:$0xff] %vm4053_vm9, %v1527_v50  ;;  %v1618_v43 = vsel %vm1602_vm10, 1.0, %v3674_v38  ;;  %v1648_v50 = vld [vmem:[#allocation4 + $0x48] sm:$0xff]  ;;  %vm4062_vm9 = vmmov %vm4060_vm2 }
 0x39c   :  { %2159 = vpow2.f32 %v1314_v29  ;;  %v1497_v27 = vpop.xlane.xlu1 %1496  ;;  %v1515_v54 = vpop.xlane.xlu0 %1514  ;;  %vm4066_vm10 = vmmov %vm4060_vm2 }
 0x39d   :  { %2161 = vrcp.f32 %v1608_v47  ;;  %v1526_v60 = vadd.f32 %v1497_v27, %v1478_v26  ;;  %v1535_v13 = vadd.f32 %v1515_v54, %v1487_v22  ;;  %v1704_v47 = vld [vmem:[#allocation5 + $0x8] sm:$0xff]  ;;  %v1466_v22 = vld [vmem:[#allocation4 + $0x30] sm:$0xff] }
 0x39e   :  { %2163 = vrcp.f32 %v1610_v37  ;;  %v1647_v12 = vld [vmem:[#allocation4 + $0x40] sm:$0xff] }
 0x39f   :  { %2165 = vrcp.f32 %v1612_v11  ;;  %v1639_v3 = vld [vmem:[#allocation4] sm:$0xff]  ;;  %1542 = vst.msk [vmem:[#allocation4 + $0x10] sm:$0xff] %vm4054_vm4, %v1526_v60 }
 0x3a0   :  { %2167 = vlog2.f32 %v1639_v3  ;;  %1551 = vst.msk [vmem:[#allocation4 + $0x58] sm:$0xff] %vm4055_vm7, %v1535_v13  ;;  %v1513_v15 = vpop.xlane.xlu1 %1512  ;;  %vm4065_vm7 = vmmov %vm4060_vm2 }
 0x3a1   :  { %v2150_v57 = vpop.eup %2149  ;;  %2169 = vrcp.f32 %v1614_v19  ;;  %v1534_v17 = vadd.f32 %v1513_v15, %v1486_v21  ;;  %v1503_v45 = vpop.xlane.xlu0 %1502 }
 0x3a2   :  { %v2152_v14 = vpop.eup %2151  ;;  %v1658_v32 = vmul.f32 0.6931472, %v2150_v57  ;;  %v1529_v49 = vadd.f32 %v1503_v45, %v1481_v36  ;;  %2171 = vrcp.f32 %v1609_v18  ;;  %v1642_v28 = vld [vmem:[#allocation4 + $0x18] sm:$0xff]  ;;  %v1623_v57 = vld [vmem:[#allocation3] sm:$0xff] }
 0x3a3   :  { %v2154_v53 = vpop.eup %2153  ;;  %1550 = vst.msk [vmem:[#allocation4 + $0x50] sm:$0xff] %vm4056_vm6, %v1534_v17  ;;  %2173 = vlog2.f32 %v1642_v28  ;;  %v1488_v37 = vmul.f32 %v2152_v14, %v1472_v23  ;;  %v3718_v17 = vld [vmem:[#allocation6 + $0x78] sm:$0xff]  ;;  %v1615_v28 = vsel %vm1599_vm3, 1.0, %v3705_v33  ;;  %vm4067_vm6 = vmmov %vm4060_vm2 }
 0x3a4   :  { %v2156_v1 = vpop.eup %2155  ;;  %v1688_v24 = vadd.f32 %v1658_v32, %v1624_v55  ;;  %1545 = vst.msk [vmem:[#allocation4 + $0x28] sm:$0xff] %vm4057_vm14, %v1529_v49  ;;  %v1501_v56 = vpop.xlane.xlu1 %1500  ;;  %2175 = vrcp.f32 %v1616_v25  ;;  %v1482_v36 = vmul.f32 %v2154_v53, %v1466_v22  ;;  %v1620_v25 = vsel %vm1604_vm0, 1.0, %v3700_v20  ;;  %v3730_v32 = vld [vmem:[#allocation6 + $0x50] sm:$0xff]  ;;  %vm4068_vm14 = vmmov %vm4060_vm2 }
 0x3a5   :  { %v3693_v58 = vpop.eup %2157  ;;  %v1528_v35 = vadd.f32 %v1501_v56, %v1480_v48  ;;  %v1519_v42 = vpop.xlane.xlu0 %1518  ;;  %2177 = vrcp.f32 %v1611_v63  ;;  %v1483_v27 = vmul.f32 %v2156_v1, %v1467_v9  ;;  %vm1606_vm15 = vcmp.eq.f32.partialorder %v3718_v17, 0.0  ;;  %v1703_v9 = vld [vmem:[#allocation5] sm:$0xff]  ;;  %v1625_v22 = vld [vmem:[#allocation3 + $0x10] sm:$0xff]  ;;  %vm4071_vm0 = vmmov %vm4060_vm2 }
 0x3a6   :  { %v2160_v6 = vpop.eup %2159  ;;  %v1720_v29 = vmul.f32 %v1688_v24, %v3628_v34  ;;  %v1641_v0 = vld [vmem:[#allocation4 + $0x10] sm:$0xff]  ;;  %v1537_v39 = vadd.f32 %v1519_v42, %v1489_v46  ;;  %v1490_v24 = vmul.f32 %v3693_v58, %v1474_v5  ;;  %vm1601_vm4 = vcmp.eq.f32.partialorder %v3730_v32, 0.0 }
 0x3a7   :  { %v2162_v4 = vpop.eup %2161  ;;  %2179 = vlog2.f32 %v1641_v0  ;;  %1544 = vst.msk [vmem:[#allocation4 + $0x20] sm:$0xff] %vm4058_vm12, %v1528_v35  ;;  %v1650_v18 = vld [vmem:[#allocation4 + $0x58] sm:$0xff]  ;;  %v1491_v30 = vmul.f32 %v2160_v6, %v1475_v8  ;;  %v985_v35 = vld [vmem:[#allocation5 + $0x30] sm:$0xff]  ;;  %vm4069_vm12 = vmmov %vm4060_vm2 }
 0x3a8   :  { %v3703_v26 = vpop.eup %2163  ;;  %2181 = vrcp.f32 %v1618_v43  ;;  %v1736_v11 = vsub.f32 %v1704_v47, %v1720_v29  ;;  %1553 = vst.msk [vmem:[#allocation4 + $0x68] sm:$0xff] %vm4059_vm5, %v1537_v39  ;;  %v1517_v34 = vpop.xlane.xlu1 %1516  ;;  %v1626_v6 = vld [vmem:[#allocation3 + $0x18] sm:$0xff]  ;;  %v1622_v47 = vsel %vm1606_vm15, 1.0, %v3718_v17  ;;  %vm4070_vm5 = vmmov %vm4060_vm2 }
 0x3a9   :  { %v3708_v16 = vpop.eup %2165  ;;  %2183 = vlog2.f32 %v1647_v12  ;;  %v1536_v60 = vadd.f32 %v1517_v34, %v1488_v37  ;;  %v1507_v54 = vpop.xlane.xlu0 %1506  ;;  %v986_v34 = vld [vmem:[#allocation5 + $0x38] sm:$0xff]  ;;  %vm4075_vm15 = vmmov %vm4071_vm0 }
 0x3aa   :  { %v2168_v19 = vpop.eup %2167  ;;  %v1754_v13 = vmul.f32 %v2162_v4, %v1736_v11  ;;  %2185 = vlog2.f32 %v1648_v50  ;;  %v1649_v31 = vld [vmem:[#allocation4 + $0x50] sm:$0xff]  ;;  %v1531_v3 = vadd.f32 %v1507_v54, %v1483_v27 }
 0x3ab   :  { %v3714_v21 = vpop.eup %2169  ;;  %v1656_v10 = vmul.f32 0.6931472, %v2168_v19  ;;  %2187 = vlog2.f32 %v1649_v31  ;;  %v1644_v15 = vld [vmem:[#allocation4 + $0x28] sm:$0xff]  ;;  %1552 = vst.msk [vmem:[#allocation4 + $0x60] sm:$0xff] %vm4060_vm2, %v1536_v60  ;;  %v987_v19 = vld [vmem:[#allocation5 + $0x40] sm:$0xff]  ;;  %v1706_v31 = vld [vmem:[#allocation5 + $0x18] sm:$0xff] }
 0x3ac   :  { %1784 = vst.msk [vmem:[%s3871_s4 + $0x8] sm:$0xff] %vm4061_vm8, %v1754_v13  ;;  %2189 = vlog2.f32 %v1644_v15  ;;  %v1505_v45 = vpop.xlane.xlu1 %1504  ;;  %v3725_v14 = vpop.eup %2171  ;;  %v3757_v15 = vld [vmem:[#allocation6 + $0x60] sm:$0xff]  ;;  %vm4072_vm2 = vmmov %vm4071_vm0 }
 0x3ad   :  { %1547 = vst.msk [vmem:[#allocation4 + $0x38] sm:$0xff] %vm4062_vm9, %v1531_v3  ;;  %2191 = vrcp.f32 %v1613_v62  ;;  %v1687_v49 = vadd.f32 %v1656_v10, %v1623_v57  ;;  %v1530_v53 = vadd.f32 %v1505_v45, %v1482_v36  ;;  %v1523_v55 = vpop.xlane.xlu0 %1522  ;;  %v2174_v63 = vpop.eup %2173  ;;  %v1617_v62 = vsel %vm1601_vm4, 1.0, %v3730_v32  ;;  %vm4073_vm8 = vmmov %vm4071_vm0 }
 0x3ae   :  { %2193 = vlog2.f32 %v1650_v18  ;;  %v1643_v48 = vld [vmem:[#allocation4 + $0x20] sm:$0xff]  ;;  %v1539_v1 = vadd.f32 %v1523_v55, %v1491_v30  ;;  %v3736_v56 = vpop.eup %2175  ;;  %v1662_v23 = vmul.f32 0.6931472, %v2174_v63  ;;  %v1705_v55 = vld [vmem:[#allocation5 + $0x10] sm:$0xff]  ;;  %vm1603_vm1 = vcmp.eq.f32.partialorder %v3757_v15, 0.0  ;;  %vm4074_vm9 = vmmov %vm4071_vm0 }
 0x3af   :  { %v1719_v46 = vmul.f32 %v1687_v49, %v3605_v61  ;;  %2195 = vlog2.f32 %v1643_v48  ;;  %v1652_v43 = vld [vmem:[#allocation4 + $0x68] sm:$0xff]  ;;  %1546 = vst.msk [vmem:[#allocation4 + $0x30] sm:$0xff] %vm4063_vm11, %v1530_v53  ;;  %v3741_v42 = vpop.eup %2177  ;;  %vm4076_vm11 = vmmov %vm4071_vm0 }
 0x3b0   :  { %2197 = vrcp.f32 %v1620_v25  ;;  %1555 = vst.msk [vmem:[#allocation4 + $0x78] sm:$0xff] %vm4064_vm13, %v1539_v1  ;;  %v1521_v58 = vpop.xlane.xlu1 %1520  ;;  %v1690_v61 = vadd.f32 %v1662_v23, %v1626_v6  ;;  %v988_v49 = vld [vmem:[#allocation5 + $0x48] sm:$0xff]  ;;  %v989_v1 = vld [vmem:[#allocation5 + $0x50] sm:$0xff]  ;;  %vm4077_vm4 = vmmov %vm4071_vm0 }
 0x3b1   :  { %v2180_v29 = vpop.eup %2179  ;;  %2199 = vrcp.f32 %v1615_v28  ;;  %v1735_v12 = vsub.f32 %v1703_v9, %v1719_v46  ;;  %v1538_v0 = vadd.f32 %v1521_v58, %v1490_v24  ;;  %v1024_v39 = vpop.xlane.xlu0 %1023  ;;  %v1628_v46 = vld [vmem:[#allocation3 + $0x28] sm:$0xff]  ;;  %v3770_v9 = vld [vmem:[#allocation6 + $0x70] sm:$0xff]  ;;  %vm4078_vm13 = vmmov %vm4071_vm0 }
 0x3b2   :  { %v3745_v4 = vpop.eup %2181  ;;  %v1660_v50 = vmul.f32 0.6931472, %v2180_v29  ;;  %2201 = vlog2.f32 %v1652_v43  ;;  %v1651_v37 = vld [vmem:[#allocation4 + $0x60] sm:$0xff]  ;;  %v1049_v11 = vadd.f32 %v1024_v39, %v985_v35  ;;  %v1722_v54 = vmul.f32 %v1690_v61, %v3634_v41 }
 0x3b3   :  { %v2184_v27 = vpop.eup %2183  ;;  %v1752_v60 = vmul.f32 %v3668_v40, %v1735_v12  ;;  %2203 = vlog2.f32 %v1651_v37  ;;  %1554 = vst.msk [vmem:[#allocation4 + $0x70] sm:$0xff] %vm4065_vm7, %v1538_v0  ;;  %v1631_v35 = vld [vmem:[#allocation3 + $0x40] sm:$0xff]  ;;  %vm1605_vm3 = vcmp.eq.f32.partialorder %v3770_v9, 0.0  ;;  %vm4079_vm7 = vmmov %vm4071_vm0 }
 0x3b4   :  { %v1646_v8 = vld [vmem:[#allocation4 + $0x38] sm:$0xff]  ;;  %v2186_v13 = vpop.eup %2185  ;;  %v1689_v3 = vadd.f32 %v1660_v50, %v1625_v22  ;;  %1066 = vst.msk [vmem:[#allocation5 + $0x30] sm:$0xff] %vm4066_vm10, %v1049_v11  ;;  %v1026_v10 = vpop.xlane.xlu1 %1025  ;;  %v1738_v41 = vsub.f32 %v1706_v31, %v1722_v54  ;;  %v1672_v57 = vmul.f32 0.6931472, %v2184_v27  ;;  %v1632_v27 = vld [vmem:[#allocation3 + $0x48] sm:$0xff]  ;;  %v1627_v22 = vld [vmem:[#allocation3 + $0x20] sm:$0xff] }
 0x3b5   :  { %2205 = vlog2.f32 %v1646_v8  ;;  %v2188_v18 = vpop.eup %2187  ;;  %1783 = vst.msk [vmem:[%s3871_s4] sm:$0xff] %vm4067_vm6, %v1752_v60  ;;  %v1050_v40 = vadd.f32 %v1026_v10, %v986_v34  ;;  %v1028_v36 = vpop.xlane.xlu0 %1027  ;;  %v990_v11 = vld [vmem:[#allocation5 + $0x58] sm:$0xff]  ;;  %v991_v60 = vld [vmem:[#allocation5 + $0x60] sm:$0xff]  ;;  %v1633_v8 = vld [vmem:[#allocation3 + $0x50] sm:$0xff] }
 0x3b6   :  { %2207 = vrcp.f32 %v1622_v47  ;;  %v2190_v5 = vpop.eup %2189  ;;  %v1721_v45 = vmul.f32 %v1689_v3, %v3657_v44  ;;  %v1645_v30 = vld [vmem:[#allocation4 + $0x30] sm:$0xff]  ;;  %v1051_v25 = vadd.f32 %v1028_v36, %v987_v19  ;;  %v1758_v63 = vmul.f32 %v3703_v26, %v1738_v41  ;;  %v1708_v19 = vld [vmem:[#allocation5 + $0x28] sm:$0xff]  ;;  %vm4080_vm10 = vmmov %vm4071_vm0 }
 0x3b7   :  { %2209 = vrcp.f32 %v1617_v62  ;;  %v3764_v53 = vpop.eup %2191  ;;  %v1666_v28 = vmul.f32 0.6931472, %v2190_v5  ;;  %v1654_v48 = vld [vmem:[#allocation4 + $0x78] sm:$0xff]  ;;  %1067 = vst.msk [vmem:[#allocation5 + $0x38] sm:$0xff] %vm4068_vm14, %v1050_v40  ;;  %v1674_v26 = vmul.f32 0.6931472, %v2186_v13  ;;  %v1695_v50 = vadd.f32 %v1672_v57, %v1631_v35  ;;  %vm4081_vm6 = vmmov %vm4071_vm0 }
 0x3b8   :  { %2211 = vlog2.f32 %v1645_v30  ;;  %v2194_v24 = vpop.eup %2193  ;;  %v1737_v23 = vsub.f32 %v1705_v55, %v1721_v45  ;;  %1068 = vst.msk [vmem:[#allocation5 + $0x40] sm:$0xff] %vm4069_vm12, %v1051_v25  ;;  %v1030_v44 = vpop.xlane.xlu1 %1029  ;;  %v1676_v6 = vmul.f32 0.6931472, %v2188_v18  ;;  %vm4082_vm14 = vmmov %vm4071_vm0 }
 0x3b9   :  { %2213 = vlog2.f32 %v1654_v48  ;;  %v2196_v43 = vpop.eup %2195  ;;  %1786 = vst.msk [vmem:[%s3871_s4 + $0x18] sm:$0xff] %vm4070_vm5, %v1758_v63  ;;  %v1692_v58 = vadd.f32 %v1666_v28, %v1628_v46  ;;  %v1052_v29 = vadd.f32 %v1030_v44, %v988_v49  ;;  %v1032_v12 = vpop.xlane.xlu0 %1031  ;;  %v1678_v13 = vmul.f32 0.6931472, %v2194_v24  ;;  %v992_v49 = vld [vmem:[#allocation5 + $0x68] sm:$0xff]  ;;  %v1634_v63 = vld [vmem:[#allocation3 + $0x58] sm:$0xff]  ;;  %v1707_v28 = vld [vmem:[#allocation5 + $0x20] sm:$0xff] }
 0x3ba   :  { %v3776_v61 = vpop.eup %2197  ;;  %v1756_v0 = vmul.f32 %v3725_v14, %v1737_v23  ;;  %v1664_v39 = vmul.f32 0.6931472, %v2196_v43  ;;  %v1653_v47 = vld [vmem:[#allocation4 + $0x70] sm:$0xff]  ;;  %v1053_v37 = vadd.f32 %v1032_v12, %v989_v1  ;;  %v1619_v14 = vsel %vm1603_vm1, 1.0, %v3757_v15  ;;  %v1630_v23 = vld [vmem:[#allocation3 + $0x38] sm:$0xff]  ;;  %vm4083_vm1 = vmmov %vm4071_vm0 }
 0x3bb   :  { %v2200_v34 = vpop.eup %2199  ;;  %v1724_v62 = vmul.f32 %v1692_v58, %v3639_v59  ;;  %2215 = vlog2.f32 %v1653_v47  ;;  %1069 = vst.msk [vmem:[#allocation5 + $0x48] sm:$0xff] %vm4071_vm0, %v1052_v29  ;;  %v1696_v18 = vadd.f32 %v1674_v26, %v1632_v27  ;;  %v1697_v41 = vadd.f32 %v1676_v6, %v1633_v8  ;;  %v993_v6 = vld [vmem:[#allocation5 + $0x70] sm:$0xff]  ;;  %v1635_v29 = vld [vmem:[#allocation3 + $0x60] sm:$0xff]  ;;  %v1636_v8 = vld [vmem:[#allocation3 + $0x68] sm:$0xff] }
 0x3bc   :  { %v2202_v54 = vpop.eup %2201  ;;  %1785 = vst.msk [vmem:[%s3871_s4 + $0x10] sm:$0xff] %vm4072_vm2, %v1756_v0  ;;  %v1691_v59 = vadd.f32 %v1664_v39, %v1627_v22  ;;  %v1034_v31 = vpop.xlane.xlu1 %1033  ;;  %v1727_v30 = vmul.f32 %v1695_v50, %v3705_v33  ;;  %2217 = vrcp.f32 %v1619_v14  ;;  %v1621_v48 = vsel %vm1605_vm3, 1.0, %v3770_v9  ;;  %vm4084_vm12 = vmmov %vm4071_vm0 }
 0x3bd   :  { %1070 = vst.msk [vmem:[#allocation5 + $0x50] sm:$0xff] %vm4073_vm8, %v1053_v37  ;;  %v2204_v3 = vpop.eup %2203  ;;  %v1740_v10 = vsub.f32 %v1708_v19, %v1724_v62  ;;  %v1054_v40 = vadd.f32 %v1034_v31, %v990_v11  ;;  %v1036_v36 = vpop.xlane.xlu0 %1035  ;;  %v1682_v44 = vmul.f32 0.6931472, %v2202_v54  ;;  %v1698_v35 = vadd.f32 %v1678_v13, %v1634_v63  ;;  %v1629_v54 = vld [vmem:[#allocation3 + $0x30] sm:$0xff]  ;;  %vm4085_vm5 = vmmov %vm4071_vm0 }
 0x3be   :  { %v1723_v57 = vmul.f32 %v1691_v59, %v3666_v51  ;;  %v1680_v45 = vmul.f32 0.6931472, %v2204_v3  ;;  %v1055_v25 = vadd.f32 %v1036_v36, %v991_v60  ;;  %v1728_v12 = vmul.f32 %v1696_v18, %v3662_v2  ;;  %v994_v60 = vld [vmem:[#allocation5 + $0x78] sm:$0xff]  ;;  %vm4086_vm3 = vmmov %vm4071_vm0 }
 0x3bf   :  { %v2206_v5 = vpop.eup %2205  ;;  %v1762_v1 = vmul.f32 %v3708_v16, %v1740_v10  ;;  %v1711_v46 = vld [vmem:[#allocation5 + $0x40] sm:$0xff]  ;;  %1071 = vst.msk [vmem:[#allocation5 + $0x58] sm:$0xff] %vm4074_vm9, %v1054_v40  ;;  %v1729_v0 = vmul.f32 %v1697_v41, %v3730_v32  ;;  %2219 = vrcp.f32 %v1621_v48  ;;  %v1700_v59 = vadd.f32 %v1682_v44, %v1636_v8  ;;  %vm4087_vm2 = vmmov %vm4071_vm0 }
 0x3c0   :  { %v3792_v55 = vpop.eup %2207  ;;  %v1670_v24 = vmul.f32 0.6931472, %v2206_v5  ;;  %v1739_v33 = vsub.f32 %v1707_v28, %v1723_v57  ;;  %v1743_v43 = vsub.f32 %v1711_v46, %v1727_v30  ;;  %1072 = vst.msk [vmem:[#allocation5 + $0x60] sm:$0xff] %vm4075_vm15, %v1055_v25  ;;  %v1038_v26 = vpop.xlane.xlu1 %1037  ;;  %v1699_v62 = vadd.f32 %v1680_v45, %v1635_v29  ;;  %v1637_v25 = vld [vmem:[#allocation3 + $0x70] sm:$0xff]  ;;  %v1638_v28 = vld [vmem:[#allocation3 + $0x78] sm:$0xff]  ;;  %vm4088_vm8 = vmmov %vm4071_vm0 }
 0x3c1   :  { %v2210_v51 = vpop.eup %2209  ;;  %1788 = vst.msk [vmem:[%s3871_s4 + $0x28] sm:$0xff] %vm4076_vm11, %v1762_v1  ;;  %v1056_v39 = vadd.f32 %v1038_v26, %v992_v49  ;;  %v1040_v47 = vpop.xlane.xlu0 %1039  ;;  %v1709_v49 = vld [vmem:[#allocation5 + $0x30] sm:$0xff]  ;;  %vm4089_vm9 = vmmov %vm4071_vm0 }
 0x3c2   :  { %v2212_v58 = vpop.eup %2211  ;;  %v1694_v16 = vadd.f32 %v1670_v24, %v1630_v23  ;;  %v1760_v37 = vmul.f32 %v3741_v42, %v1739_v33  ;;  %v1768_v27 = vmul.f32 %v2200_v34, %v1743_v43  ;;  %v1712_v22 = vld [vmem:[#allocation5 + $0x48] sm:$0xff]  ;;  %v1057_v2 = vadd.f32 %v1040_v47, %v993_v6  ;;  %v1710_v42 = vld [vmem:[#allocation5 + $0x38] sm:$0xff] }
 0x3c3   :  { %v2214_v50 = vpop.eup %2213  ;;  %v1668_v11 = vmul.f32 0.6931472, %v2212_v58  ;;  %v1744_v19 = vsub.f32 %v1712_v22, %v1728_v12  ;;  %1073 = vst.msk [vmem:[#allocation5 + $0x68] sm:$0xff] %vm4077_vm4, %v1056_v39  ;;  %v1731_v30 = vmul.f32 %v1699_v62, %v3757_v15  ;;  %v1732_v24 = vmul.f32 %v1700_v59, %v3700_v20 }
 0x3c4   :  { %v1726_v14 = vmul.f32 %v1694_v16, %v3650_v52  ;;  %v1713_v13 = vld [vmem:[#allocation5 + $0x50] sm:$0xff]  ;;  %1787 = vst.msk [vmem:[%s3871_s4 + $0x20] sm:$0xff] %vm4078_vm13, %v1760_v37  ;;  %v1730_v52 = vmul.f32 %v1698_v35, %v3674_v38  ;;  %v1042_v31 = vpop.xlane.xlu1 %1041  ;;  %v1686_v10 = vmul.f32 0.6931472, %v2214_v50 }
 0x3c5   :  { %v1693_v32 = vadd.f32 %v1668_v11, %v1629_v54  ;;  %1791 = vst.msk [vmem:[%s3871_s4 + $0x40] sm:$0xff] %vm4079_vm7, %v1768_v27  ;;  %v1745_v34 = vsub.f32 %v1713_v13, %v1729_v0  ;;  %v2216_v3 = vpop.eup %2215  ;;  %v1770_v41 = vmul.f32 %v3736_v56, %v1744_v19  ;;  %v1058_v40 = vadd.f32 %v1042_v31, %v994_v60 }
 0x3c6   :  { %v1742_v18 = vsub.f32 %v1710_v42, %v1726_v14  ;;  %1074 = vst.msk [vmem:[#allocation5 + $0x70] sm:$0xff] %vm4080_vm10, %v1057_v2  ;;  %v1684_v36 = vmul.f32 0.6931472, %v2216_v3  ;;  %v1714_v45 = vld [vmem:[#allocation5 + $0x58] sm:$0xff]  ;;  %v2218_v1 = vpop.eup %2217  ;;  %v1702_v46 = vadd.f32 %v1686_v10, %v1638_v28 }
 0x3c7   :  { %v1725_v5 = vmul.f32 %v1693_v32, %v3689_v7  ;;  %v1772_v57 = vmul.f32 %v2210_v51, %v1745_v34  ;;  %1792 = vst.msk [vmem:[%s3871_s4 + $0x48] sm:$0xff] %vm4081_vm6, %v1770_v41  ;;  %v1746_v56 = vsub.f32 %v1714_v45, %v1730_v52  ;;  %v1715_v63 = vld [vmem:[#allocation5 + $0x60] sm:$0xff] }
 0x3c8   :  { %v1766_v38 = vmul.f32 %v3714_v21, %v1742_v18  ;;  %1075 = vst.msk [vmem:[#allocation5 + $0x78] sm:$0xff] %vm4082_vm14, %v1058_v40  ;;  %v1747_v7 = vsub.f32 %v1715_v63, %v1731_v30  ;;  %v1701_v15 = vadd.f32 %v1684_v36, %v1637_v25  ;;  %v1734_v35 = vmul.f32 %v1702_v46, %v3718_v17 }
 0x3c9   :  { %v1741_v48 = vsub.f32 %v1709_v49, %v1725_v5  ;;  %1793 = vst.msk [vmem:[%s3871_s4 + $0x50] sm:$0xff] %vm4083_vm1, %v1772_v57  ;;  %v1774_v21 = vmul.f32 %v3745_v4, %v1746_v56  ;;  %v2220_v4 = vpop.eup %2219 }
 0x3ca   :  { %1790 = vst.msk [vmem:[%s3871_s4 + $0x38] sm:$0xff] %vm4084_vm12, %v1766_v38  ;;  %v1776_v23 = vmul.f32 %v2218_v1, %v1747_v7  ;;  %v1716_v33 = vld [vmem:[#allocation5 + $0x68] sm:$0xff]  ;;  %v1733_v44 = vmul.f32 %v1701_v15, %v3770_v9 }
 0x3cb   :  { %v1764_v51 = vmul.f32 %v3764_v53, %v1741_v48  ;;  %1794 = vst.msk [vmem:[%s3871_s4 + $0x58] sm:$0xff] %vm4085_vm5, %v1774_v21  ;;  %v1748_v43 = vsub.f32 %v1716_v33, %v1732_v24 }
 0x3cc   :  { %1795 = vst.msk [vmem:[%s3871_s4 + $0x60] sm:$0xff] %vm4086_vm3, %v1776_v23 }
 0x3cd   :  { %1789 = vst.msk [vmem:[%s3871_s4 + $0x30] sm:$0xff] %vm4071_vm0, %v1764_v51  ;;  %v1717_v20 = vld [vmem:[#allocation5 + $0x70] sm:$0xff]  ;;  %v1778_v53 = vmul.f32 %v3776_v61, %v1748_v43 }
 0x3ce   :  { %v1749_v9 = vsub.f32 %v1717_v20, %v1733_v44 }
 0x3cf   :  { %v1718_v26 = vld [vmem:[#allocation5 + $0x78] sm:$0xff]  ;;  %1796 = vst.msk [vmem:[%s3871_s4 + $0x68] sm:$0xff] %vm4087_vm2, %v1778_v53 }
 0x3d0   :  { %v1780_v6 = vmul.f32 %v2220_v4, %v1749_v9  ;;  %v1750_v58 = vsub.f32 %v1718_v26, %v1734_v35 }
 0x3d2   :  { %1797 = vst.msk [vmem:[%s3871_s4 + $0x70] sm:$0xff] %vm4088_vm8, %v1780_v6  ;;  %v1782_v29 = vmul.f32 %v3792_v55, %v1750_v58 }
 0x3d4   :  { %1798 = vst.msk [vmem:[%s3871_s4 + $0x78] sm:$0xff] %vm4089_vm9, %v1782_v29 }
 0x3d5   :  { %1803 = vsyncpa [#allocation8], 1 }

</bundles_post_ra>
